<compile_context>
chip_gen: v6e
topology: v6e:2x2x1
jax: 0.10.0
libtpu: 0.0.40
codegen_flags: <defaults>
</compile_context>

<pallas_src>
import jax
import jax.numpy as jnp
import numpy as np
from jax import lax
from jax.experimental import pallas as pl
from jax.experimental.pallas import tpu as pltpu

EPS = 1e-10
REF_PREC = lax.Precision.HIGHEST  # only used by the pure-JAX reference


# ------------------------------------------------------------------
# Kernel bodies
# ------------------------------------------------------------------
def _ce_terms(probs_ref, t0_ref, t1_ref, mrow_ref, ce_ref):
    """Vectorized weighted binary CE over the whole (3, T) slab -> (3, 1)."""
    P = probs_ref[0]                                    # (3, T)
    T0 = t0_ref[0]                                      # (3, T)
    T1 = t1_ref[0]                                      # (3, T)
    m = mrow_ref[0]                                     # (1, T)
    inv_msum = 1.0 / jnp.maximum(jnp.sum(m), EPS)
    # class weights: 0.5 / clamp(target.sum(T) / clamp(mask.sum(T)))
    w0 = 0.5 / jnp.maximum(jnp.sum(T0, axis=1, keepdims=True) * inv_msum, EPS)   # (3,1)
    w1 = 0.5 / jnp.maximum(jnp.sum(T1, axis=1, keepdims=True) * inv_msum, EPS)   # (3,1)
    ce = 0.5 * (-T0 * jnp.log(jnp.maximum(1.0 - P, EPS)) * w0
                - T1 * jnp.log(jnp.maximum(P, EPS)) * w1)                         # (3,T)
    ce_ref[0] = jnp.sum(ce * m, axis=1, keepdims=True) * inv_msum                # (3,1)


def _corr_loss(head_mean, t0_ref, t1_ref, mrow_ref, mcol_ref, t0c_ref, t1c_ref,
               corr_ref):
    """(1 - cosine(HaH, H cov H)) * mask[:,0].

    H = (I - J/s) * (m (x) m)  =>  (H x H) * (m (x) m) expands to
        v_i v_j x_ij - 1/s (v_i r_i u_j + u_i v_j c_j) + (q/s^2) u_i u_j
    with u = m^2, v = m^3 — computed with pure VPU broadcasts (exact f32).
    """
    mrow = mrow_ref[0]                                  # (1, T)
    mcol = mcol_ref[0]                                  # (T, 1)
    t0e_row = t0_ref[0][2:3, :]                         # (1, T)  end target, class 0
    t1e_row = t1_ref[0][2:3, :]                         # (1, T)  end target, class 1
    t0e_col = t0c_ref[0]                                # (T, 1)
    t1e_col = t1c_ref[0]                                # (T, 1)

    u_row = mrow * mrow
    v_row = u_row * mrow
    u_col = mcol * mcol
    v_col = u_col * mcol

    inv_s = 1.0 / jnp.maximum(jnp.sum(t0e_row) + jnp.sum(t1e_row), EPS)

    def centered(x):
        r = jnp.sum(x * mrow, axis=1, keepdims=True)    # (T, 1): sum_j x_ij m_j
        c = jnp.sum(x * mcol, axis=0, keepdims=True)    # (1, T): sum_i m_i x_ij
        q = jnp.sum(c * mrow)                           # sum_ij m_i x_ij m_j
        return (v_col * (v_row * x)
                - inv_s * ((v_col * r) * u_row + u_col * (v_row * c))
                + (q * inv_s * inv_s) * (u_col * u_row))

    cov = t0e_col * t0e_row + t1e_col * t1e_row         # target @ target^T (rank 2)
    tc = centered(cov)
    ac = centered(head_mean)

    # fused epilogue reductions: only ac/tc live (no outer-product temporaries)
    num = jnp.maximum(jnp.sum(ac * tc), EPS)
    den = jnp.maximum(jnp.sqrt(jnp.sum(ac * ac)) * jnp.sqrt(jnp.sum(tc * tc)), EPS)
    corr_ref[0] = (1.0 - num / den) * mrow[0:1, 0:1]     # (1, 1)


def _make_single_chunk_kernel(n_heads):
    """All heads arrive in one (nH, T, T) block: no scratch, no head grid axis."""
    inv_heads = 1.0 / float(n_heads)

    def kernel(probs_ref, t0_ref, t1_ref, mrow_ref, mcol_ref, t0c_ref, t1c_ref,
               attn_ref, ce_ref, corr_ref):
        _ce_terms(probs_ref, t0_ref, t1_ref, mrow_ref, ce_ref)
        head_mean = jnp.sum(attn_ref[0].astype(jnp.float32), axis=0) * inv_heads
        _corr_loss(head_mean, t0_ref, t1_ref, mrow_ref, mcol_ref, t0c_ref,
                   t1c_ref, corr_ref)

    return kernel


def _make_chunked_kernel(n_heads, n_chunks):
    """Heads streamed in chunks; (T, T) f32 scratch accumulates the head sum."""
    inv_heads = 1.0 / float(n_heads)   # true head count, not the grid extent

    def kernel(probs_ref, t0_ref, t1_ref, mrow_ref, mcol_ref, t0c_ref, t1c_ref,
               attn_ref, ce_ref, corr_ref, acc_ref):
        c = pl.program_id(1)
        chunk = jnp.sum(attn_ref[0].astype(jnp.float32), axis=0)   # (T, T)

        @pl.when(c == 0)
        def _():
            _ce_terms(probs_ref, t0_ref, t1_ref, mrow_ref, ce_ref)
            acc_ref[...] = chunk

        @pl.when(c > 0)
        def _():
            acc_ref[...] = acc_ref[...] + chunk

        @pl.when(c == n_chunks - 1)
        def _():
            _corr_loss(acc_ref[...] * inv_heads, t0_ref, t1_ref, mrow_ref,
                       mcol_ref, t0c_ref, t1c_ref, corr_ref)

    return kernel


def _pick_head_chunk(n_heads, seq_len, itemsize, budget_bytes=24 * 1024 * 1024):
    """Largest divisor of n_heads whose double-buffered attn block fits the budget."""
    tile = seq_len * seq_len * itemsize
    avail = budget_bytes - 8 * seq_len * seq_len * 4    # headroom for f32 epilogue
    cap = max(int(avail // (2 * tile)), 1)
    best = 1
    for d in range(1, n_heads + 1):
        if n_heads % d == 0 and d <= cap:
            best = d
    return best


# ------------------------------------------------------------------
# Module forward (glue + one fused pallas_call)
# ------------------------------------------------------------------
def ce_criterion_multi(x, label, start, end, attn, mask, l_step=1.0,
                       head_chunk=None):
    # x: (B, T, 3) probabilities; label/start/end: (B, T) ints in {-1, 0, 1};
    # attn: (B, nH, T, T) any float dtype (kept native, cast in-kernel); mask: (B, T).
    # TODO(synk): only the default use_weight=True path is implemented
    # (use_weight=False returns un-reduced per-position tensors in the original).
    B, T, _ = x.shape
    nH = attn.shape[1]
    maskf = mask.astype(jnp.float32)
    probs = jnp.transpose(x.astype(jnp.float32), (0, 2, 1))          # (B, 3, T)
    tgt = jnp.stack([label, start, end], axis=1)                     # (B, 3, T)
    # convert_categorical with n_classes=2: negatives drop out of both classes
    t0 = (tgt == 0).astype(jnp.float32) * maskf[:, None, :]
    t1 = (tgt == 1).astype(jnp.float32) * maskf[:, None, :]
    mrow = maskf[:, None, :]                                         # (B, 1, T)
    mcol = maskf[:, :, None]                                         # (B, T, 1)
    t0e_col = t0[:, 2, :, None]                                      # (B, T, 1)
    t1e_col = t1[:, 2, :, None]                                      # (B, T, 1)

    if head_chunk is None:
        head_chunk = _pick_head_chunk(nH, T, attn.dtype.itemsize)
    assert nH % head_chunk == 0
    n_chunks = nH // head_chunk

    out_shape = (jax.ShapeDtypeStruct((B, 3, 1), jnp.float32),
                 jax.ShapeDtypeStruct((B, 1, 1), jnp.float32))
    cost = pl.CostEstimate(
        flops=int(B * nH * T * T + 20 * B * T * T),
        transcendentals=int(6 * B * T),
        bytes_accessed=int(attn.size * attn.dtype.itemsize + 40 * B * T))

    if n_chunks == 1:
        kernel = _make_single_chunk_kernel(nH)
        grid = (B,)
        in_specs = [
            pl.BlockSpec((1, 3, T), lambda b: (b, 0, 0)),
            pl.BlockSpec((1, 3, T), lambda b: (b, 0, 0)),
            pl.BlockSpec((1, 3, T), lambda b: (b, 0, 0)),
            pl.BlockSpec((1, 1, T), lambda b: (b, 0, 0)),
            pl.BlockSpec((1, T, 1), lambda b: (b, 0, 0)),
            pl.BlockSpec((1, T, 1), lambda b: (b, 0, 0)),
            pl.BlockSpec((1, T, 1), lambda b: (b, 0, 0)),
            pl.BlockSpec((1, nH, T, T), lambda b: (b, 0, 0, 0)),
        ]
        out_specs = (pl.BlockSpec((1, 3, 1), lambda b: (b, 0, 0)),
                     pl.BlockSpec((1, 1, 1), lambda b: (b, 0, 0)))
        scratch_shapes = ()
        semantics = ("parallel",)
    else:
        kernel = _make_chunked_kernel(nH, n_chunks)
        grid = (B, n_chunks)
        in_specs = [
            pl.BlockSpec((1, 3, T), lambda b, c: (b, 0, 0)),
            pl.BlockSpec((1, 3, T), lambda b, c: (b, 0, 0)),
            pl.BlockSpec((1, 3, T), lambda b, c: (b, 0, 0)),
            pl.BlockSpec((1, 1, T), lambda b, c: (b, 0, 0)),
            pl.BlockSpec((1, T, 1), lambda b, c: (b, 0, 0)),
            pl.BlockSpec((1, T, 1), lambda b, c: (b, 0, 0)),
            pl.BlockSpec((1, T, 1), lambda b, c: (b, 0, 0)),
            pl.BlockSpec((1, head_chunk, T, T), lambda b, c: (b, c, 0, 0)),
        ]
        out_specs = (pl.BlockSpec((1, 3, 1), lambda b, c: (b, 0, 0)),
                     pl.BlockSpec((1, 1, 1), lambda b, c: (b, 0, 0)))
        scratch_shapes = (pltpu.VMEM((T, T), jnp.float32),)
        semantics = ("parallel", "arbitrary")

    ce_b, corr_b = pl.pallas_call(
        kernel,
        out_shape=out_shape,
        grid=grid,
        in_specs=in_specs,
        out_specs=out_specs,
        scratch_shapes=scratch_shapes,
        compiler_params=pltpu.CompilerParams(
            dimension_semantics=semantics,
            vmem_limit_bytes=32 * 1024 * 1024),
        cost_estimate=cost,
    )(probs, t0, t1, mrow, mcol, t0e_col, t1e_col, attn)

    losses = jnp.mean(ce_b[:, :, 0], axis=0)                         # (3,)
    attn_out = jnp.mean(corr_b[:, 0, 0]) * (l_step ** 2)             # i == 2 at loop exit
    return losses[0], losses[1], losses[2], attn_out


# ------------------------------------------------------------------
# Pure-JAX reference (mirrors the PyTorch code) for verification
# ------------------------------------------------------------------
def reference(x, label, start, end, attn, mask, l_step=1.0):
    B, T, _ = x.shape
    mask = mask.astype(jnp.float32)
    msum = jnp.maximum(mask.sum(1), EPS)
    targets, weights = [], []
    for t in (label, start, end):
        oh = jnp.stack([(t == 0), (t == 1)], axis=-1).astype(jnp.float32)
        oh = oh * mask[:, :, None]
        w = 0.5 / jnp.maximum(oh.sum(1) / msum[:, None], EPS)
        targets.append(oh)
        weights.append(w)
    losses = []
    for i in range(3):
        p = x[:, :, i:i + 1].astype(jnp.float32)
        xc = jnp.concatenate([1.0 - p, p], axis=2)
        tmp = -targets[i] * jnp.log(jnp.maximum(xc, EPS))
        tmp = tmp * weights[i][:, None, :]
        tmp = jnp.sum(tmp.mean(2) * mask, axis=1) / msum
        losses.append(jnp.mean(tmp))
    target = targets[2]
    eye = jnp.eye(T, dtype=jnp.float32)[None]
    tsum = jnp.maximum(target.sum((1, 2)).reshape(B, 1, 1), EPS)
    mo = mask[:, :, None] * mask[:, None, :]
    Hm = (eye - 1.0 / tsum) * mo
    cov = jnp.einsum('btc,bsc->bts', target, target, precision=REF_PREC)
    cov = jnp.einsum('bij,bjk->bik',
                     jnp.einsum('bij,bjk->bik', Hm, cov, precision=REF_PREC),
                     Hm, precision=REF_PREC) * mo
    a = attn.astype(jnp.float32).mean(1)
    a = jnp.einsum('bij,bjk->bik',
                   jnp.einsum('bij,bjk->bik', Hm, a, precision=REF_PREC),
                   Hm, precision=REF_PREC) * mo
    den = jnp.sqrt((a * a).sum((1, 2))) * jnp.sqrt((cov * cov).sum((1, 2)))
    v = 1.0 - jnp.maximum((a * cov).sum((1, 2)), EPS) / jnp.maximum(den, EPS)
    attn_out = jnp.mean(v * mask[:, 0]) * (l_step ** 2)
    return losses[0], losses[1], losses[2], attn_out


if __name__ == "__main__":
    B, nH, T = 2, 4, 128
    key = jax.random.PRNGKey(0)
    k1, k2, k3, k4, k5 = jax.random.split(key, 5)
    x = jax.random.uniform(k1, (B, T, 3), jnp.float32, minval=0.02, maxval=0.98)
    label = jax.random.randint(k2, (B, T), -1, 2)
    start = jax.random.randint(k3, (B, T), -1, 2)
    end = jax.random.randint(k4, (B, T), -1, 2)
    attn = jax.random.uniform(k5, (B, nH, T, T), jnp.float32)
    lengths = jnp.array([T, 3 * T // 4])
    mask = (jnp.arange(T)[None, :] < lengths[:, None]).astype(jnp.float32)

    # Path 1: all heads blocked into a single DMA per batch (no scratch, grid=(B,)).
    out = jax.block_until_ready(ce_criterion_multi(x, label, start, end, attn, mask))
    ref = jax.block_until_ready(reference(x, label, start, end, attn, mask))
    for o, r in zip(out, ref):
        np.testing.assert_allclose(np.asarray(o), np.asarray(r), rtol=2e-2, atol=1e-3)

    # Path 2: chunked heads (accumulator variant) with bf16 attention kept native.
    attn_bf16 = attn.astype(jnp.bfloat16)
    out2 = jax.block_until_ready(
        ce_criterion_multi(x, label, start, end, attn_bf16, mask, head_chunk=2))
    ref2 = jax.block_until_ready(reference(x, label, start, end, attn_bf16, mask))
    for o, r in zip(out2, ref2):
        np.testing.assert_allclose(np.asarray(o), np.asarray(r), rtol=2e-2, atol=1e-3)

    print("KERNEL_OK")
</pallas_src>

<mosaic_0001>
module attributes {stable_mosaic.version = 11 : i64} {
  func.func @kernel(%arg0: i32, %arg1: memref<1x3x128xf32, #tpu.memory_space<vmem>>, %arg2: memref<1x3x128xf32, #tpu.memory_space<vmem>>, %arg3: memref<1x3x128xf32, #tpu.memory_space<vmem>>, %arg4: memref<1x1x128xf32, #tpu.memory_space<vmem>>, %arg5: memref<1x128x1xf32, #tpu.memory_space<vmem>>, %arg6: memref<1x128x1xf32, #tpu.memory_space<vmem>>, %arg7: memref<1x128x1xf32, #tpu.memory_space<vmem>>, %arg8: memref<1x4x128x128xf32, #tpu.memory_space<vmem>>, %arg9: memref<1x3x1xf32, #tpu.memory_space<vmem>>, %arg10: memref<1x1x1xf32, #tpu.memory_space<vmem>>) attributes {dimension_semantics = [#tpu.dimension_semantics<parallel>], iteration_bounds = array<i64: 2>, scalar_prefetch = 0 : i64, scratch_operands = 0 : i64, tpu.core_type = #tpu.core_type<tc>, window_params = [{transform_indices = @transform_0, window_bounds = array<i64: 1, 3, 128>}, {transform_indices = @transform_1, window_bounds = array<i64: 1, 3, 128>}, {transform_indices = @transform_2, window_bounds = array<i64: 1, 3, 128>}, {transform_indices = @transform_3, window_bounds = array<i64: 1, 1, 128>}, {transform_indices = @transform_4, window_bounds = array<i64: 1, 128, 1>}, {transform_indices = @transform_5, window_bounds = array<i64: 1, 128, 1>}, {transform_indices = @transform_6, window_bounds = array<i64: 1, 128, 1>}, {transform_indices = @transform_7, window_bounds = array<i64: 1, 4, 128, 128>}, {transform_indices = @transform_8, window_bounds = array<i64: 1, 3, 1>}, {transform_indices = @transform_9, window_bounds = array<i64: 1, 1, 1>}]} {
    %c0 = arith.constant 0 : index
    %c0_0 = arith.constant 0 : index
    %c0_1 = arith.constant 0 : index
    %0 = vector.load %arg1[%c0, %c0_0, %c0_1] : memref<1x3x128xf32, #tpu.memory_space<vmem>>, vector<1x3x128xf32>
    %1 = vector.shape_cast %0 : vector<1x3x128xf32> to vector<3x128xf32>
    %c0_2 = arith.constant 0 : index
    %c0_3 = arith.constant 0 : index
    %c0_4 = arith.constant 0 : index
    %2 = vector.load %arg2[%c0_2, %c0_3, %c0_4] : memref<1x3x128xf32, #tpu.memory_space<vmem>>, vector<1x3x128xf32>
    %3 = vector.shape_cast %2 : vector<1x3x128xf32> to vector<3x128xf32>
    %c0_5 = arith.constant 0 : index
    %c0_6 = arith.constant 0 : index
    %c0_7 = arith.constant 0 : index
    %4 = vector.load %arg3[%c0_5, %c0_6, %c0_7] : memref<1x3x128xf32, #tpu.memory_space<vmem>>, vector<1x3x128xf32>
    %5 = vector.shape_cast %4 : vector<1x3x128xf32> to vector<3x128xf32>
    %c0_8 = arith.constant 0 : index
    %c0_9 = arith.constant 0 : index
    %c0_10 = arith.constant 0 : index
    %6 = vector.load %arg4[%c0_8, %c0_9, %c0_10] : memref<1x1x128xf32, #tpu.memory_space<vmem>>, vector<1x1x128xf32>
    %7 = vector.shape_cast %6 : vector<1x1x128xf32> to vector<1x128xf32>
    %8 = vector.shape_cast %7 : vector<1x128xf32> to vector<1x1x128xf32>
    %cst = arith.constant dense<0.000000e+00> : vector<1xf32>
    %9 = vector.multi_reduction <add>, %8, %cst [1, 2] : vector<1x1x128xf32> to vector<1xf32>
    %10 = vector.shape_cast %9 : vector<1xf32> to vector<1x1x1xf32>
    %11 = vector.extract %10[0, 0, 0] : f32 from vector<1x1x1xf32>
    %cst_11 = arith.constant 1.000000e-10 : f32
    %12 = arith.maximumf %11, %cst_11 : f32
    %cst_12 = arith.constant 1.000000e+00 : f32
    %13 = arith.divf %cst_12, %12 : f32
    %cst_13 = arith.constant dense<0.000000e+00> : vector<3xf32>
    %14 = vector.multi_reduction <add>, %3, %cst_13 [1] : vector<3x128xf32> to vector<3xf32>
    %15 = vector.shape_cast %14 : vector<3xf32> to vector<3x1xf32>
    %16 = vector.broadcast %13 : f32 to vector<3x1xf32>
    %17 = arith.mulf %15, %16 : vector<3x1xf32>
    %cst_14 = arith.constant 1.000000e-10 : f32
    %18 = vector.broadcast %cst_14 : f32 to vector<3x1xf32>
    %19 = arith.maximumf %17, %18 : vector<3x1xf32>
    %cst_15 = arith.constant 5.000000e-01 : f32
    %20 = vector.broadcast %cst_15 : f32 to vector<3x1xf32>
    %21 = arith.divf %20, %19 : vector<3x1xf32>
    %cst_16 = arith.constant dense<0.000000e+00> : vector<3xf32>
    %22 = vector.multi_reduction <add>, %5, %cst_16 [1] : vector<3x128xf32> to vector<3xf32>
    %23 = vector.shape_cast %22 : vector<3xf32> to vector<3x1xf32>
    %24 = vector.broadcast %13 : f32 to vector<3x1xf32>
    %25 = arith.mulf %23, %24 : vector<3x1xf32>
    %cst_17 = arith.constant 1.000000e-10 : f32
    %26 = vector.broadcast %cst_17 : f32 to vector<3x1xf32>
    %27 = arith.maximumf %25, %26 : vector<3x1xf32>
    %cst_18 = arith.constant 5.000000e-01 : f32
    %28 = vector.broadcast %cst_18 : f32 to vector<3x1xf32>
    %29 = arith.divf %28, %27 : vector<3x1xf32>
    %cst_19 = arith.constant 0.000000e+00 : f32
    %30 = vector.broadcast %cst_19 : f32 to vector<3x128xf32>
    %31 = arith.subf %30, %3 : vector<3x128xf32>
    %cst_20 = arith.constant 1.000000e+00 : f32
    %32 = vector.broadcast %cst_20 : f32 to vector<3x128xf32>
    %33 = arith.subf %32, %1 : vector<3x128xf32>
    %cst_21 = arith.constant 1.000000e-10 : f32
    %34 = vector.broadcast %cst_21 : f32 to vector<3x128xf32>
    %35 = arith.maximumf %33, %34 : vector<3x128xf32>
    %36 = math.log %35 : vector<3x128xf32>
    %37 = arith.mulf %31, %36 : vector<3x128xf32>
    %38 = vector.broadcast %21 : vector<3x1xf32> to vector<3x128xf32>
    %39 = arith.mulf %37, %38 : vector<3x128xf32>
    %cst_22 = arith.constant 1.000000e-10 : f32
    %40 = vector.broadcast %cst_22 : f32 to vector<3x128xf32>
    %41 = arith.maximumf %1, %40 : vector<3x128xf32>
    %42 = math.log %41 : vector<3x128xf32>
    %43 = arith.mulf %5, %42 : vector<3x128xf32>
    %44 = vector.broadcast %29 : vector<3x1xf32> to vector<3x128xf32>
    %45 = arith.mulf %43, %44 : vector<3x128xf32>
    %46 = arith.subf %39, %45 : vector<3x128xf32>
    %cst_23 = arith.constant 5.000000e-01 : f32
    %47 = vector.broadcast %cst_23 : f32 to vector<3x128xf32>
    %48 = arith.mulf %47, %46 : vector<3x128xf32>
    %49 = vector.broadcast %7 : vector<1x128xf32> to vector<3x128xf32>
    %50 = arith.mulf %48, %49 : vector<3x128xf32>
    %cst_24 = arith.constant dense<0.000000e+00> : vector<3xf32>
    %51 = vector.multi_reduction <add>, %50, %cst_24 [1] : vector<3x128xf32> to vector<3xf32>
    %52 = vector.shape_cast %51 : vector<3xf32> to vector<3x1xf32>
    %53 = vector.broadcast %13 : f32 to vector<3x1xf32>
    %54 = arith.mulf %52, %53 : vector<3x1xf32>
    %c0_25 = arith.constant 0 : index
    %c0_26 = arith.constant 0 : index
    %c0_27 = arith.constant 0 : index
    %55 = vector.load %arg9[%c0_25, %c0_26, %c0_27] : memref<1x3x1xf32, #tpu.memory_space<vmem>>, vector<1x3x1xf32>
    %56 = vector.shape_cast %55 : vector<1x3x1xf32> to vector<3x1xf32>
    %57 = vector.shape_cast %54 : vector<3x1xf32> to vector<1x3x1xf32>
    tpu.vector_store %arg9[%c0_25, %c0_26, %c0_27], %57 {strides = array<i32>} : memref<1x3x1xf32, #tpu.memory_space<vmem>>, vector<1x3x1xf32>,
    %c0_28 = arith.constant 0 : index
    %c0_29 = arith.constant 0 : index
    %c0_30 = arith.constant 0 : index
    %c0_31 = arith.constant 0 : index
    %58 = vector.load %arg8[%c0_28, %c0_29, %c0_30, %c0_31] : memref<1x4x128x128xf32, #tpu.memory_space<vmem>>, vector<1x4x128x128xf32>
    %59 = vector.shape_cast %58 : vector<1x4x128x128xf32> to vector<4x128x128xf32>
    %cst_32 = arith.constant dense<0.000000e+00> : vector<128x128xf32>
    %60 = vector.multi_reduction <add>, %59, %cst_32 [0] : vector<4x128x128xf32> to vector<128x128xf32>
    %cst_33 = arith.constant 2.500000e-01 : f32
    %61 = vector.broadcast %cst_33 : f32 to vector<128x128xf32>
    %62 = arith.mulf %60, %61 : vector<128x128xf32>
    %c0_34 = arith.constant 0 : index
    %c0_35 = arith.constant 0 : index
    %c0_36 = arith.constant 0 : index
    %63 = vector.load %arg4[%c0_34, %c0_35, %c0_36] : memref<1x1x128xf32, #tpu.memory_space<vmem>>, vector<1x1x128xf32>
    %64 = vector.shape_cast %63 : vector<1x1x128xf32> to vector<1x128xf32>
    %c0_37 = arith.constant 0 : index
    %c0_38 = arith.constant 0 : index
    %c0_39 = arith.constant 0 : index
    %65 = vector.load %arg5[%c0_37, %c0_38, %c0_39] : memref<1x128x1xf32, #tpu.memory_space<vmem>>, vector<1x128x1xf32>
    %66 = vector.shape_cast %65 : vector<1x128x1xf32> to vector<128x1xf32>
    %c0_40 = arith.constant 0 : index
    %c0_41 = arith.constant 0 : index
    %c0_42 = arith.constant 0 : index
    %67 = vector.load %arg2[%c0_40, %c0_41, %c0_42] : memref<1x3x128xf32, #tpu.memory_space<vmem>>, vector<1x3x128xf32>
    %68 = vector.shape_cast %67 : vector<1x3x128xf32> to vector<3x128xf32>
    %69 = vector.extract_strided_slice %68 {offsets = [2, 0], sizes = [1, 128], strides = [1, 1]} : vector<3x128xf32> to vector<1x128xf32>
    %c0_43 = arith.constant 0 : index
    %c0_44 = arith.constant 0 : index
    %c0_45 = arith.constant 0 : index
    %70 = vector.load %arg3[%c0_43, %c0_44, %c0_45] : memref<1x3x128xf32, #tpu.memory_space<vmem>>, vector<1x3x128xf32>
    %71 = vector.shape_cast %70 : vector<1x3x128xf32> to vector<3x128xf32>
    %72 = vector.extract_strided_slice %71 {offsets = [2, 0], sizes = [1, 128], strides = [1, 1]} : vector<3x128xf32> to vector<1x128xf32>
    %c0_46 = arith.constant 0 : index
    %c0_47 = arith.constant 0 : index
    %c0_48 = arith.constant 0 : index
    %73 = vector.load %arg6[%c0_46, %c0_47, %c0_48] : memref<1x128x1xf32, #tpu.memory_space<vmem>>, vector<1x128x1xf32>
    %74 = vector.shape_cast %73 : vector<1x128x1xf32> to vector<128x1xf32>
    %c0_49 = arith.constant 0 : index
    %c0_50 = arith.constant 0 : index
    %c0_51 = arith.constant 0 : index
    %75 = vector.load %arg7[%c0_49, %c0_50, %c0_51] : memref<1x128x1xf32, #tpu.memory_space<vmem>>, vector<1x128x1xf32>
    %76 = vector.shape_cast %75 : vector<1x128x1xf32> to vector<128x1xf32>
    %77 = arith.mulf %64, %64 : vector<1x128xf32>
    %78 = arith.mulf %77, %64 : vector<1x128xf32>
    %79 = arith.mulf %66, %66 : vector<128x1xf32>
    %80 = arith.mulf %79, %66 : vector<128x1xf32>
    %81 = vector.shape_cast %69 : vector<1x128xf32> to vector<1x1x128xf32>
    %cst_52 = arith.constant dense<0.000000e+00> : vector<1xf32>
    %82 = vector.multi_reduction <add>, %81, %cst_52 [1, 2] : vector<1x1x128xf32> to vector<1xf32>
    %83 = vector.shape_cast %82 : vector<1xf32> to vector<1x1x1xf32>
    %84 = vector.extract %83[0, 0, 0] : f32 from vector<1x1x1xf32>
    %85 = vector.shape_cast %72 : vector<1x128xf32> to vector<1x1x128xf32>
    %cst_53 = arith.constant dense<0.000000e+00> : vector<1xf32>
    %86 = vector.multi_reduction <add>, %85, %cst_53 [1, 2] : vector<1x1x128xf32> to vector<1xf32>
    %87 = vector.shape_cast %86 : vector<1xf32> to vector<1x1x1xf32>
    %88 = vector.extract %87[0, 0, 0] : f32 from vector<1x1x1xf32>
    %89 = arith.addf %84, %88 : f32
    %cst_54 = arith.constant 1.000000e-10 : f32
    %90 = arith.maximumf %89, %cst_54 : f32
    %cst_55 = arith.constant 1.000000e+00 : f32
    %91 = arith.divf %cst_55, %90 : f32
    %92 = vector.broadcast %74 : vector<128x1xf32> to vector<128x128xf32>
    %93 = vector.broadcast %69 : vector<1x128xf32> to vector<128x128xf32>
    %94 = arith.mulf %92, %93 : vector<128x128xf32>
    %95 = vector.broadcast %76 : vector<128x1xf32> to vector<128x128xf32>
    %96 = vector.broadcast %72 : vector<1x128xf32> to vector<128x128xf32>
    %97 = arith.mulf %95, %96 : vector<128x128xf32>
    %98 = arith.addf %94, %97 : vector<128x128xf32>
    %99 = vector.broadcast %64 : vector<1x128xf32> to vector<128x128xf32>
    %100 = arith.mulf %98, %99 : vector<128x128xf32>
    %cst_56 = arith.constant dense<0.000000e+00> : vector<128xf32>
    %101 = vector.multi_reduction <add>, %100, %cst_56 [1] : vector<128x128xf32> to vector<128xf32>
    %102 = vector.shape_cast %101 : vector<128xf32> to vector<128x1xf32>
    %103 = vector.broadcast %66 : vector<128x1xf32> to vector<128x128xf32>
    %104 = arith.mulf %98, %103 : vector<128x128xf32>
    %cst_57 = arith.constant dense<0.000000e+00> : vector<128xf32>
    %105 = vector.multi_reduction <add>, %104, %cst_57 [0] : vector<128x128xf32> to vector<128xf32>
    %106 = vector.shape_cast %105 : vector<128xf32> to vector<1x128xf32>
    %107 = arith.mulf %106, %64 : vector<1x128xf32>
    %108 = vector.shape_cast %107 : vector<1x128xf32> to vector<1x1x128xf32>
    %cst_58 = arith.constant dense<0.000000e+00> : vector<1xf32>
    %109 = vector.multi_reduction <add>, %108, %cst_58 [1, 2] : vector<1x1x128xf32> to vector<1xf32>
    %110 = vector.shape_cast %109 : vector<1xf32> to vector<1x1x1xf32>
    %111 = vector.extract %110[0, 0, 0] : f32 from vector<1x1x1xf32>
    %112 = vector.broadcast %78 : vector<1x128xf32> to vector<128x128xf32>
    %113 = arith.mulf %112, %98 : vector<128x128xf32>
    %114 = vector.broadcast %80 : vector<128x1xf32> to vector<128x128xf32>
    %115 = arith.mulf %114, %113 : vector<128x128xf32>
    %116 = arith.mulf %80, %102 : vector<128x1xf32>
    %117 = vector.broadcast %116 : vector<128x1xf32> to vector<128x128xf32>
    %118 = vector.broadcast %77 : vector<1x128xf32> to vector<128x128xf32>
    %119 = arith.mulf %117, %118 : vector<128x128xf32>
    %120 = arith.mulf %78, %106 : vector<1x128xf32>
    %121 = vector.broadcast %79 : vector<128x1xf32> to vector<128x128xf32>
    %122 = vector.broadcast %120 : vector<1x128xf32> to vector<128x128xf32>
    %123 = arith.mulf %121, %122 : vector<128x128xf32>
    %124 = arith.addf %119, %123 : vector<128x128xf32>
    %125 = vector.broadcast %91 : f32 to vector<128x128xf32>
    %126 = arith.mulf %125, %124 : vector<128x128xf32>
    %127 = arith.subf %115, %126 : vector<128x128xf32>
    %128 = arith.mulf %111, %91 : f32
    %129 = arith.mulf %128, %91 : f32
    %130 = vector.broadcast %79 : vector<128x1xf32> to vector<128x128xf32>
    %131 = vector.broadcast %77 : vector<1x128xf32> to vector<128x128xf32>
    %132 = arith.mulf %130, %131 : vector<128x128xf32>
    %133 = vector.broadcast %129 : f32 to vector<128x128xf32>
    %134 = arith.mulf %133, %132 : vector<128x128xf32>
    %135 = arith.addf %127, %134 : vector<128x128xf32>
    %136 = vector.broadcast %64 : vector<1x128xf32> to vector<128x128xf32>
    %137 = arith.mulf %62, %136 : vector<128x128xf32>
    %cst_59 = arith.constant dense<0.000000e+00> : vector<128xf32>
    %138 = vector.multi_reduction <add>, %137, %cst_59 [1] : vector<128x128xf32> to vector<128xf32>
    %139 = vector.shape_cast %138 : vector<128xf32> to vector<128x1xf32>
    %140 = vector.broadcast %66 : vector<128x1xf32> to vector<128x128xf32>
    %141 = arith.mulf %62, %140 : vector<128x128xf32>
    %cst_60 = arith.constant dense<0.000000e+00> : vector<128xf32>
    %142 = vector.multi_reduction <add>, %141, %cst_60 [0] : vector<128x128xf32> to vector<128xf32>
    %143 = vector.shape_cast %142 : vector<128xf32> to vector<1x128xf32>
    %144 = arith.mulf %143, %64 : vector<1x128xf32>
    %145 = vector.shape_cast %144 : vector<1x128xf32> to vector<1x1x128xf32>
    %cst_61 = arith.constant dense<0.000000e+00> : vector<1xf32>
    %146 = vector.multi_reduction <add>, %145, %cst_61 [1, 2] : vector<1x1x128xf32> to vector<1xf32>
    %147 = vector.shape_cast %146 : vector<1xf32> to vector<1x1x1xf32>
    %148 = vector.extract %147[0, 0, 0] : f32 from vector<1x1x1xf32>
    %149 = vector.broadcast %78 : vector<1x128xf32> to vector<128x128xf32>
    %150 = arith.mulf %149, %62 : vector<128x128xf32>
    %151 = vector.broadcast %80 : vector<128x1xf32> to vector<128x128xf32>
    %152 = arith.mulf %151, %150 : vector<128x128xf32>
    %153 = arith.mulf %80, %139 : vector<128x1xf32>
    %154 = vector.broadcast %153 : vector<128x1xf32> to vector<128x128xf32>
    %155 = vector.broadcast %77 : vector<1x128xf32> to vector<128x128xf32>
    %156 = arith.mulf %154, %155 : vector<128x128xf32>
    %157 = arith.mulf %78, %143 : vector<1x128xf32>
    %158 = vector.broadcast %79 : vector<128x1xf32> to vector<128x128xf32>
    %159 = vector.broadcast %157 : vector<1x128xf32> to vector<128x128xf32>
    %160 = arith.mulf %158, %159 : vector<128x128xf32>
    %161 = arith.addf %156, %160 : vector<128x128xf32>
    %162 = vector.broadcast %91 : f32 to vector<128x128xf32>
    %163 = arith.mulf %162, %161 : vector<128x128xf32>
    %164 = arith.subf %152, %163 : vector<128x128xf32>
    %165 = arith.mulf %148, %91 : f32
    %166 = arith.mulf %165, %91 : f32
    %167 = vector.broadcast %79 : vector<128x1xf32> to vector<128x128xf32>
    %168 = vector.broadcast %77 : vector<1x128xf32> to vector<128x128xf32>
    %169 = arith.mulf %167, %168 : vector<128x128xf32>
    %170 = vector.broadcast %166 : f32 to vector<128x128xf32>
    %171 = arith.mulf %170, %169 : vector<128x128xf32>
    %172 = arith.addf %164, %171 : vector<128x128xf32>
    %173 = arith.mulf %172, %135 : vector<128x128xf32>
    %174 = vector.shape_cast %173 : vector<128x128xf32> to vector<1x128x128xf32>
    %cst_62 = arith.constant dense<0.000000e+00> : vector<1xf32>
    %175 = vector.multi_reduction <add>, %174, %cst_62 [1, 2] : vector<1x128x128xf32> to vector<1xf32>
    %176 = vector.shape_cast %175 : vector<1xf32> to vector<1x1x1xf32>
    %177 = vector.extract %176[0, 0, 0] : f32 from vector<1x1x1xf32>
    %cst_63 = arith.constant 1.000000e-10 : f32
    %178 = arith.maximumf %177, %cst_63 : f32
    %179 = arith.mulf %172, %172 : vector<128x128xf32>
    %180 = vector.shape_cast %179 : vector<128x128xf32> to vector<1x128x128xf32>
    %cst_64 = arith.constant dense<0.000000e+00> : vector<1xf32>
    %181 = vector.multi_reduction <add>, %180, %cst_64 [1, 2] : vector<1x128x128xf32> to vector<1xf32>
    %182 = vector.shape_cast %181 : vector<1xf32> to vector<1x1x1xf32>
    %183 = vector.extract %182[0, 0, 0] : f32 from vector<1x1x1xf32>
    %184 = math.sqrt %183 : f32
    %185 = arith.mulf %135, %135 : vector<128x128xf32>
    %186 = vector.shape_cast %185 : vector<128x128xf32> to vector<1x128x128xf32>
    %cst_65 = arith.constant dense<0.000000e+00> : vector<1xf32>
    %187 = vector.multi_reduction <add>, %186, %cst_65 [1, 2] : vector<1x128x128xf32> to vector<1xf32>
    %188 = vector.shape_cast %187 : vector<1xf32> to vector<1x1x1xf32>
    %189 = vector.extract %188[0, 0, 0] : f32 from vector<1x1x1xf32>
    %190 = math.sqrt %189 : f32
    %191 = arith.mulf %184, %190 : f32
    %cst_66 = arith.constant 1.000000e-10 : f32
    %192 = arith.maximumf %191, %cst_66 : f32
    %193 = arith.divf %178, %192 : f32
    %cst_67 = arith.constant 1.000000e+00 : f32
    %194 = arith.subf %cst_67, %193 : f32
    %195 = vector.extract_strided_slice %64 {offsets = [0, 0], sizes = [1, 1], strides = [1, 1]} : vector<1x128xf32> to vector<1x1xf32>
    %196 = vector.broadcast %194 : f32 to vector<1x1xf32>
    %197 = arith.mulf %196, %195 : vector<1x1xf32>
    %c0_68 = arith.constant 0 : index
    %c0_69 = arith.constant 0 : index
    %c0_70 = arith.constant 0 : index
    %198 = vector.load %arg10[%c0_68, %c0_69, %c0_70] : memref<1x1x1xf32, #tpu.memory_space<vmem>>, vector<1x1x1xf32>
    %199 = vector.shape_cast %198 : vector<1x1x1xf32> to vector<1x1xf32>
    %200 = vector.shape_cast %197 : vector<1x1xf32> to vector<1x1x1xf32>
    tpu.vector_store %arg10[%c0_68, %c0_69, %c0_70], %200 {strides = array<i32>} : memref<1x1x1xf32, #tpu.memory_space<vmem>>, vector<1x1x1xf32>,
    return
  }
  func.func @transform_0(%arg0: i32) -> (i32, i32, i32) {
    %c0_i32 = arith.constant 0 : i32
    %c0_i32_0 = arith.constant 0 : i32
    %c0_i32_1 = arith.constant 0 : i32
    return %arg0, %c0_i32, %c0_i32_0 : i32, i32, i32
  }
  func.func @transform_1(%arg0: i32) -> (i32, i32, i32) {
    %c0_i32 = arith.constant 0 : i32
    %c0_i32_0 = arith.constant 0 : i32
    %c0_i32_1 = arith.constant 0 : i32
    return %arg0, %c0_i32, %c0_i32_0 : i32, i32, i32
  }
  func.func @transform_2(%arg0: i32) -> (i32, i32, i32) {
    %c0_i32 = arith.constant 0 : i32
    %c0_i32_0 = arith.constant 0 : i32
    %c0_i32_1 = arith.constant 0 : i32
    return %arg0, %c0_i32, %c0_i32_0 : i32, i32, i32
  }
  func.func @transform_3(%arg0: i32) -> (i32, i32, i32) {
    %c0_i32 = arith.constant 0 : i32
    %c0_i32_0 = arith.constant 0 : i32
    %c0_i32_1 = arith.constant 0 : i32
    return %arg0, %c0_i32, %c0_i32_0 : i32, i32, i32
  }
  func.func @transform_4(%arg0: i32) -> (i32, i32, i32) {
    %c0_i32 = arith.constant 0 : i32
    %c0_i32_0 = arith.constant 0 : i32
    %c0_i32_1 = arith.constant 0 : i32
    return %arg0, %c0_i32, %c0_i32_0 : i32, i32, i32
  }
  func.func @transform_5(%arg0: i32) -> (i32, i32, i32) {
    %c0_i32 = arith.constant 0 : i32
    %c0_i32_0 = arith.constant 0 : i32
    %c0_i32_1 = arith.constant 0 : i32
    return %arg0, %c0_i32, %c0_i32_0 : i32, i32, i32
  }
  func.func @transform_6(%arg0: i32) -> (i32, i32, i32) {
    %c0_i32 = arith.constant 0 : i32
    %c0_i32_0 = arith.constant 0 : i32
    %c0_i32_1 = arith.constant 0 : i32
    return %arg0, %c0_i32, %c0_i32_0 : i32, i32, i32
  }
  func.func @transform_7(%arg0: i32) -> (i32, i32, i32, i32) {
    %c0_i32 = arith.constant 0 : i32
    %c0_i32_0 = arith.constant 0 : i32
    %c0_i32_1 = arith.constant 0 : i32
    %c0_i32_2 = arith.constant 0 : i32
    return %arg0, %c0_i32, %c0_i32_0, %c0_i32_1 : i32, i32, i32, i32
  }
  func.func @transform_8(%arg0: i32) -> (i32, i32, i32) {
    %c0_i32 = arith.constant 0 : i32
    %c0_i32_0 = arith.constant 0 : i32
    %c0_i32_1 = arith.constant 0 : i32
    return %arg0, %c0_i32, %c0_i32_0 : i32, i32, i32
  }
  func.func @transform_9(%arg0: i32) -> (i32, i32, i32) {
    %c0_i32 = arith.constant 0 : i32
    %c0_i32_0 = arith.constant 0 : i32
    %c0_i32_1 = arith.constant 0 : i32
    return %arg0, %c0_i32, %c0_i32_0 : i32, i32, i32
  }
}

</mosaic_0001>

<bundles_post_ra>
// kernel: tpu_custom_call.1
= control target key start
LH: loop header
LB: loop body
LE: loop exit
PB: predicated region body
PF: predicated region fallthrough
CT: control target
= control target key end

     0   :  { %15 = vsyncpa [#allocation3], 0  ;;  %s3553_s0 = inlined_call_operand.vmem [shape: f32[2,3,128], index: 0, kind: input, shape index: {}]   ;;  %s3554_s1 = inlined_call_operand.vmem [shape: f32[2,3,128], index: 1, kind: input, shape index: {}]   ;;  %s3555_s2 = inlined_call_operand.vmem [shape: f32[2,3,128], index: 2, kind: input, shape index: {}]   ;;  %s3556_s3 = inlined_call_operand.vmem [shape: f32[2,1,128], index: 3, kind: input, shape index: {}]   ;;  %s3557_s4 = inlined_call_operand.vmem [shape: f32[2,128,1], index: 4, kind: input, shape index: {}]   ;;  %s3558_s5 = inlined_call_operand.vmem [shape: f32[2,128,1], index: 5, kind: input, shape index: {}]   ;;  %s3559_s6 = inlined_call_operand.vmem [shape: f32[2,128,1], index: 6, kind: input, shape index: {}]   ;;  %s3560_s7 = inlined_call_operand.hbm [shape: f32[2,4,128,128], index: 7, kind: input, shape index: {}]   ;;  %s3561_s8 = inlined_call_operand.vmem [shape: f32[2,3,1], index: 8, kind: output, shape index: {0}]   ;;  %s3562_s9 = inlined_call_operand.vmem [shape: f32[2,1,1], index: 9, kind: output, shape index: {1}]  }
   0x1   :  { %17 = vsyncpa [#allocation3 + $0x1], 0  ;;  %s2546_s30 = smov 0   ;;  %s2548_s10 = smov 0  }
   0x2   :  { %s2550_s11 = smov 0   ;;  %s2552_s12 = smov 0  }
   0x3 LB: > { %s2565_s13 = sadd.s32 4294967295, %s2489_s12   ;;  %s2568_s14 = sadd.s32 1, %s2489_s12   ;;  %s2489_s12 = sphi %s2552_s12, %s3613_s12   ;;  %s2485_s11 = sphi %s2550_s11, %s3612_s11   ;;  %s2481_s10 = sphi %s2548_s10, %s3611_s10   ;;  %s2477_s30 = sphi %s2546_s30, %s3610_s30  }
   0x4   : > { %s209_s15 = ssub.s32 %s2489_s12, %s2568_s14  ;;  %s212_s16 = sadd.s32 1, %s2485_s11 }
   0x5   : > { %p210_p0 = scmp.eq.s32.totalorder %s209_s15, 0  ;;  %p219_p1 = scmp.ne.s32.totalorder %s2485_s11, %s2481_s10 }
   0x6   : > { %p220_p2 = scmp.eq.s32.totalorder %s2489_s12, 0  ;;  %p225_p3 = scmp.ne.s32.totalorder %s2481_s10, %s2477_s30 }
   0x7   : > { %s2578_s17 = scalar_select %p210_p0, %s2485_s11, %s212_s16  }
   0x8   : > { %p221_p4 = por %p220_p2, %p219_p1  ;;  %p226_p5 = scmp.eq.s32.totalorder %s2565_s13, 0 }
   0x9   : > { %p2351_p6 = scmp.lt.s32.totalorder %s2489_s12, 2  ;;  %s352_s19 = sand.u32 1, %s2485_s11  }
   0xa   : > { %p2582_p7 = por %p226_p5, %p225_p3  ;;  %s2298_s20 = sshll.u32 %s352_s19, 9 }
   0xb   : > { %s2315_s21 = sshll.u32 %s2489_s12, 13  ;;  %s356_s25 = scalar_lea.vmem [#allocation2], %s2298_s20 }
   0xc   : > { %s3578_s18 = scalar_select %p2582_p7, 1, 0 }
   0xd   : > { %s2591_s24 = scalar_lea.hbm %s3560_s7, %s2315_s21  ;;  %s363_s26 = sshll.u32 %s356_s25, 4  ;;  %s2593_s26 = int_to_ptr.vmem [resolvable:$true] %s363_s26 }
   0xe   : > { %p2595_p8 = pnand %p2351_p6, %p221_p4  ;;  %s2600_s28 = scalar_lea.sflag [#allocation3], %s352_s19 }
   0xf   : > { %s2427_s29 = scalar_lea.hbm %s2591_s24, 8192  ;;  %s2432_s16 = scalar_lea.hbm %s3560_s7, 16384 }
  0x10   : > { %p2428_p10 = scmp.ne.s32.totalorder %s2591_s24, %s2427_s29  ;;  %p2429_p11 = pneg %p2595_p8 }
  0x11   : > { %p2433_p0 = scmp.lt.s32.totalorder %s2591_s24, %s3560_s7  ;;  %p2434_p1 = scmp.lt.s32.totalorder %s2432_s16, %s2427_s29 }
  0x12   : > { %p2430_p12 = pnand %p2429_p11, %p2428_p10 }
  0x13   : > { %p2435_p2 = por %p2434_p1, %p2433_p0 }
  0x14   : > { %p2431_p13 = pneg %p2430_p12 }
  0x16   : > { %p2436_p3 = pnand %p2435_p2, %p2431_p13 }
  0x18   : > { %2439 = shalt.err (!%p2436_p3)
}
  0x19   : > { %s2440_s19 = scalar_lea.vmem %s2593_s26, 8192  ;;  %s2491_s22 = smov [#allocation2]  }
  0x1a   : > { %p2441_p4 = scmp.ne.s32.totalorder %s2593_s26, %s2440_s19  ;;  %s2445_s23 = sshll.u32 %s2491_s22, 4  ;;  %s2446_s23 = int_to_ptr.vmem [resolvable:$false] %s2445_s23 }
  0x1b   : > { %s2447_s25 = scalar_lea.vmem %s2446_s23, 16384  ;;  %p2448_p10 = scmp.lt.s32.totalorder %s2593_s26, %s2446_s23 }
  0x1c   : > { %p2443_p5 = pnand %p2441_p4, %p2429_p11  ;;  %p2449_p12 = scmp.lt.s32.totalorder %s2447_s25, %s2440_s19 }
  0x1e   : > { %p2444_p6 = pneg %p2443_p5  ;;  %p2450_p9 = por %p2449_p12, %p2448_p10 }
  0x20   : > { %p2451_p7 = pnand %p2450_p9, %p2444_p6 }
  0x22   : > { %2454 = shalt.err (!%p2451_p7)
}
  0x23   : > { %s2492_s29 = smov 128   ;;  %s2493_s30 = smov 8  }
  0x24   : > { %2350 = dma.hbm_to_vmem [thread:$0]  (!%p2595_p8), %s2591_s24, 8192, %s2593_s26, %s2600_s28, %s2492_s29, %s2492_s29, %s2493_s30  }
  0x25   : > { %p371_p11 = scmp.lt.s32.totalorder %s2489_s12, 3  ;;  %p3580_p13 = scmp.ge.s32.totalorder %s2489_s12, 1 }
  0x27   : > { %p372_p0 = pnand %p3580_p13, %p371_p11 }
  0x29   : > { %375 = sbr.rel (%p372_p0) target bundleno = 1119 (0x45f), region = 52 }
  0x2e   : > { %s377_s15 = sand.u32 1, %s2481_s10   ;;  %p3581_p7 = scmp.ne.s32.totalorder %s3578_s18, 0 }
  0x2f   : > { %s2302_s16 = sshll.u32 %s377_s15, 9  ;;  %s378_s20 = scalar_lea.sflag [#allocation3], %s377_s15 }
  0x30   : > { %s2625_s21 = scalar_lea.vmem [#allocation2], %s2302_s16 }
  0x31   : > { %2472 = dma.done.wait (%p3581_p7), %s378_s20, 8192  }
  0x32   : > { %2474 = vsyncadd (%p3581_p7), %s378_s20, 4294959104  ;;  %p448_p9 = scmp.lt.s32.totalorder %s2565_s13, 1  ;;  %v2494_v0 = vmov 0   ;;  %vm489_vm0 = vcmask 1040384   ;;  %vm504_vm1 = vcmask 1042432   ;;  %vm545_vm2 = vcmask 2048  }
  0x33   : > { %2389 = vset.pattern.permute.xlu1 %v2494_v0  ;;  %2388 = vset.pattern.permute.xlu0 %v2494_v0  ;;  %s2495_s30 = smov 1e-10   ;;  %vm2122_vm7 = vcmask 0  }
  0x34   : > { %s3615_s13 = smov (!%p448_p9, %s2565_s13), 1 }
  0x35   : > { %s2639_s26 = scalar_lea.vmem %s3556_s3, %s3615_s13  ;;  %s2642_s27 = sshll.u32 %s3615_s13, 2 }
  0x36   : > { %v488_v1 = vld [vmem:[%s2639_s26] sm:$0x1]  ;;  %s451_s19 = scalar_lea.vmem %s3553_s0, %s2642_s27  ;;  %s459_s25 = scalar_lea.vmem %s3555_s2, %s2642_s27 }
  0x37   : > { %v490_v2 = vsel %vm489_vm0, %v488_v1, 0.0  ;;  %v487_v3 = vld [vmem:[%s459_s25] sm:$0x7]  ;;  %s455_s15 = scalar_lea.vmem %s3554_s1, %s2642_s27  ;;  %s2316_s16 = sshll.u32 %s3615_s13, 7 }
  0x38   : > { %v2654_v4 = vld [vmem:[%s459_s25] sm:$0x7]  ;;  %491 = vadd.xlane.f32.xlu0 %v490_v2  ;;  %v513_v5 = vsel %vm504_vm1, %v487_v3, 0.0  ;;  %s2672_s24 = scalar_lea.vmem %s3558_s5, %s2316_s16  ;;  %s2690_s25 = scalar_lea.vmem %s3557_s4, %s2316_s16 }
  0x39   : > { %v485_v6 = vld [vmem:[%s451_s19] sm:$0x7]  ;;  %v774_v7 = vrot.slane %v2654_v4, 2  ;;  %514 = vadd.xlane.f32.xlu1 %v513_v5  ;;  %v695_v23 = vld [vmem:[%s2672_s24 + $0x8] sm:$0xff]  ;;  %s2680_s19 = scalar_lea.vmem %s3559_s6, %s2316_s16  ;;  %v696_v28 = vld [vmem:[%s2672_s24 + $0x10] sm:$0xff] }
  0x3a   : > { %v486_v8 = vld [vmem:[%s455_s15] sm:$0x7]  ;;  %v521_v9 = vsub.f32 1.0, %v485_v6  ;;  %v527_v10 = vmax.f32 %v485_v6, 1e-10  ;;  %v711_v26 = vld [vmem:[%s2680_s19 + $0x8] sm:$0xff] }
  0x3b   : > { %v505_v11 = vsel %vm504_vm1, %v486_v8, 0.0  ;;  %v2663_v12 = vld [vmem:[%s455_s15] sm:$0x7]  ;;  %v776_v13 = vsel %vm489_vm0, %v774_v7, 0.0  ;;  %v520_v19 = vsub.f32 0.0, %v486_v8  ;;  %v2694_v29 = vld [vmem:[%s2690_s25 + $0x8] sm:$0xff] }
  0x3c   : > { %v761_v14 = vrot.slane %v2663_v12, 2  ;;  %v522_v15 = vmax.f32 %v521_v9, 1e-10  ;;  %2390 = vlog2.f32 %v527_v10  ;;  %506 = vadd.xlane.f32.xlu0 %v505_v11  ;;  %v710_v25 = vld [vmem:[%s2680_s19] sm:$0xff]  ;;  %v712_v30 = vld [vmem:[%s2680_s19 + $0x10] sm:$0xff]  ;;  %v697_v32 = vld [vmem:[%s2672_s24 + $0x18] sm:$0xff] }
  0x3d   : > { %777 = vadd.xlane.f32.xlu1 %v776_v13  ;;  %v694_v27 = vld [vmem:[%s2672_s24] sm:$0xff]  ;;  %v699_v33 = vld [vmem:[%s2672_s24 + $0x28] sm:$0xff]  ;;  %v713_v34 = vld [vmem:[%s2680_s19 + $0x18] sm:$0xff]  ;;  %v535_v13 = vlaneseq }
  0x3e   : > { %2392 = vlog2.f32 %v522_v15  ;;  %v763_v16 = vsel %vm489_vm0, %v761_v14, 0.0  ;;  %v714_v31 = vld [vmem:[%s2680_s19 + $0x20] sm:$0xff]  ;;  %v679_v35 = vld [vmem:[%s2690_s25 + $0x18] sm:$0xff]  ;;  %v716_v37 = vld [vmem:[%s2680_s19 + $0x30] sm:$0xff] }
  0x3f   : > { %v2704_v36 = vld [vmem:[%s2690_s25] sm:$0xff]  ;;  %v701_v39 = vld [vmem:[%s2672_s24 + $0x38] sm:$0xff]  ;;  %v2711_v40 = vld [vmem:[%s2690_s25 + $0x10] sm:$0xff] }
  0x40   : > { %764 = vadd.xlane.f32.xlu0 %v763_v16  ;;  %v698_v38 = vld [vmem:[%s2672_s24 + $0x20] sm:$0xff]  ;;  %v681_v41 = vld [vmem:[%s2690_s25 + $0x28] sm:$0xff]  ;;  %v700_v44 = vld [vmem:[%s2672_s24 + $0x30] sm:$0xff] }
  0x41   : > { %v715_v42 = vld [vmem:[%s2680_s19 + $0x28] sm:$0xff]  ;;  %v718_v43 = vld [vmem:[%s2680_s19 + $0x40] sm:$0xff]  ;;  %v683_v47 = vld [vmem:[%s2690_s25 + $0x38] sm:$0xff] }
  0x42   : > { %v703_v45 = vld [vmem:[%s2672_s24 + $0x48] sm:$0xff]  ;;  %v2720_v46 = vld [vmem:[%s2690_s25 + $0x20] sm:$0xff]  ;;  %v717_v48 = vld [vmem:[%s2680_s19 + $0x38] sm:$0xff] }
  0x43   : > { %v720_v49 = vld [vmem:[%s2680_s19 + $0x50] sm:$0xff]  ;;  %v702_v50 = vld [vmem:[%s2672_s24 + $0x40] sm:$0xff]  ;;  %v705_v51 = vld [vmem:[%s2672_s24 + $0x58] sm:$0xff] }
  0x44   : > { %v682_v52 = vld [vmem:[%s2690_s25 + $0x30] sm:$0xff]  ;;  %v685_v53 = vld [vmem:[%s2690_s25 + $0x48] sm:$0xff]  ;;  %v722_v55 = vld [vmem:[%s2680_s19 + $0x60] sm:$0xff] }
  0x45   : > { %v719_v54 = vld [vmem:[%s2680_s19 + $0x48] sm:$0xff]  ;;  %v704_v56 = vld [vmem:[%s2672_s24 + $0x50] sm:$0xff]  ;;  %v684_v58 = vld [vmem:[%s2690_s25 + $0x40] sm:$0xff] }
  0x46   : > { %v707_v57 = vld [vmem:[%s2672_s24 + $0x68] sm:$0xff]  ;;  %v687_v59 = vld [vmem:[%s2690_s25 + $0x58] sm:$0xff]  ;;  %v724_v61 = vld [vmem:[%s2680_s19 + $0x70] sm:$0xff] }
  0x47   : > { %v721_v60 = vld [vmem:[%s2680_s19 + $0x58] sm:$0xff]  ;;  %v706_v62 = vld [vmem:[%s2672_s24 + $0x60] sm:$0xff]  ;;  %v686_v0 = vld [vmem:[%s2690_s25 + $0x50] sm:$0xff] }
  0x48   : > { %v709_v63 = vld [vmem:[%s2672_s24 + $0x78] sm:$0xff]  ;;  %v689_v1 = vld [vmem:[%s2690_s25 + $0x68] sm:$0xff]  ;;  %v708_v5 = vld [vmem:[%s2672_s24 + $0x70] sm:$0xff] }
  0x49   : > { %v2391_v17 = vpop.eup %2390  ;;  %v723_v2 = vld [vmem:[%s2680_s19 + $0x68] sm:$0xff]  ;;  %v688_v6 = vld [vmem:[%s2690_s25 + $0x60] sm:$0xff]  ;;  %v725_v7 = vld [vmem:[%s2680_s19 + $0x78] sm:$0xff] }
  0x4a   : > { %v529_v18 = vmul.f32 0.6931472, %v2391_v17  ;;  %v690_v8 = vld [vmem:[%s2690_s25 + $0x70] sm:$0xff] }
  0x4b   : > { %v2393_v20 = vpop.eup %2392 }
  0x4c   : > { %v2674_v21 = vmul.f32 %v529_v18, %v487_v3  ;;  %v524_v22 = vmul.f32 0.6931472, %v2393_v20  ;;  %v691_v3 = vld [vmem:[%s2690_s25 + $0x78] sm:$0xff]  ;;  %v547_v18 = vld [vmem:[%s2625_s21] sm:$0xff]  ;;  %v536_v20 = vshrl.u32 %v535_v13, 7 }
  0x4d   : > { %v599_v13 = vld [vmem:[%s2625_s21 + $0x1a0] sm:$0xff] }
  0x4e   : > { %v2682_v24 = vmul.f32 %v524_v22, %v520_v19  ;;  %798 = vperm.xlu1 %2389, %v695_v23   ;;  %v563_v19 = vld [vmem:[%s2625_s21 + $0x80] sm:$0xff]  ;;  %v548_v22 = vld [vmem:[%s2625_s21 + $0x8] sm:$0xff] }
  0x4f   : > { %v564_v23 = vld [vmem:[%s2625_s21 + $0x88] sm:$0xff] }
  0x52   : > { %893 = vperm.xlu1 %2389, %v710_v25  }
  0x56   : > { %898 = vperm.xlu1 %2389, %v711_v26   ;;  %793 = vperm.xlu0 %2388, %v694_v27   ;;  %v611_v26 = vadd.f32 %v563_v19, %v547_v18 }
  0x5a   : > { %803 = vperm.xlu1 %2389, %v696_v28   ;;  %1068 = vperm.xlu0 %2388, %v2694_v29  }
  0x5e   : > { %903 = vperm.xlu1 %2389, %v712_v30   ;;  %913 = vperm.xlu0 %2388, %v714_v31   ;;  %v614_v30 = vadd.f32 %v564_v23, %v548_v22  ;;  %v579_v31 = vld [vmem:[%s2625_s21 + $0x100] sm:$0xff] }
  0x62   : > { %808 = vperm.xlu1 %2389, %v697_v32   ;;  %818 = vperm.xlu0 %2388, %v699_v33   ;;  %v873_v32 = vsub.s32 2, %v536_v20 }
  0x66   : > { %908 = vperm.xlu1 %2389, %v713_v34   ;;  %1078 = vperm.xlu0 %2388, %v679_v35   ;;  %v580_v34 = vld [vmem:[%s2625_s21 + $0x108] sm:$0xff] }
  0x6a   : > { %1063 = vperm.xlu1 %2389, %v2704_v36   ;;  %923 = vperm.xlu0 %2388, %v716_v37   ;;  %v2762_v37 = vsub.s32 0, %v536_v20 }
  0x6e   : > { %813 = vperm.xlu1 %2389, %v698_v38   ;;  %828 = vperm.xlu0 %2388, %v701_v39   ;;  %v612_v38 = vadd.f32 %v611_v26, %v579_v31  ;;  %v549_v39 = vld [vmem:[%s2625_s21 + $0x10] sm:$0xff] }
  0x72   : > { %1073 = vperm.xlu1 %2389, %v2711_v40   ;;  %1088 = vperm.xlu0 %2388, %v681_v41   ;;  %v565_v41 = vld [vmem:[%s2625_s21 + $0x90] sm:$0xff] }
  0x76   : > { %918 = vperm.xlu1 %2389, %v715_v42   ;;  %933 = vperm.xlu0 %2388, %v718_v43   ;;  %v2767_v42 = vrot.slane %v2654_v4, %v873_v32 }
  0x7a   : > { %823 = vperm.xlu1 %2389, %v700_v44   ;;  %838 = vperm.xlu0 %2388, %v703_v45   ;;  %v615_v44 = vadd.f32 %v614_v30, %v580_v34  ;;  %v595_v45 = vld [vmem:[%s2625_s21 + $0x180] sm:$0xff]  ;;  %v582_v30 = vld [vmem:[%s2625_s21 + $0x118] sm:$0xff] }
  0x7e   : > { %1083 = vperm.xlu1 %2389, %v2720_v46   ;;  %1098 = vperm.xlu0 %2388, %v683_v47   ;;  %v2771_v47 = vrot.slane %v2663_v12, %v873_v32 }
  0x82   : > { %928 = vperm.xlu1 %2389, %v717_v48   ;;  %943 = vperm.xlu0 %2388, %v720_v49   ;;  %v596_v48 = vld [vmem:[%s2625_s21 + $0x188] sm:$0xff]  ;;  %v551_v49 = vld [vmem:[%s2625_s21 + $0x20] sm:$0xff] }
  0x86   : > { %833 = vperm.xlu1 %2389, %v702_v50   ;;  %848 = vperm.xlu0 %2388, %v705_v51   ;;  %v567_v50 = vld [vmem:[%s2625_s21 + $0xa0] sm:$0xff] }
  0x87   : > { %v2777_v51 = vld [vmem:[%s2639_s26] sm:$0x1] }
  0x8a   : > { %1093 = vperm.xlu1 %2389, %v682_v52   ;;  %1108 = vperm.xlu0 %2388, %v685_v53   ;;  %v617_v52 = vadd.f32 %v565_v41, %v549_v39  ;;  %v2781_v53 = vrot.slane %v2777_v51, %v2762_v37 }
  0x8e   : > { %938 = vperm.xlu1 %2389, %v719_v54   ;;  %953 = vperm.xlu0 %2388, %v722_v55   ;;  %v613_v54 = vadd.f32 %v612_v38, %v595_v45  ;;  %v581_v55 = vld [vmem:[%s2625_s21 + $0x110] sm:$0xff] }
  0x92   : > { %843 = vperm.xlu1 %2389, %v704_v56   ;;  %858 = vperm.xlu0 %2388, %v707_v57  }
  0x96   : > { %1103 = vperm.xlu1 %2389, %v684_v58   ;;  %1118 = vperm.xlu0 %2388, %v687_v59   ;;  %v616_v58 = vadd.f32 %v615_v44, %v596_v48  ;;  %v623_v59 = vadd.f32 %v567_v50, %v551_v49  ;;  %v598_v44 = vld [vmem:[%s2625_s21 + $0x198] sm:$0xff] }
  0x9a   : > { %948 = vperm.xlu1 %2389, %v721_v60   ;;  %963 = vperm.xlu0 %2388, %v724_v61  }
  0x9e   : > { %853 = vperm.xlu1 %2389, %v706_v62   ;;  %868 = vperm.xlu0 %2388, %v709_v63   ;;  %v583_v62 = vld [vmem:[%s2625_s21 + $0x120] sm:$0xff] }
  0xa2   : > { %1113 = vperm.xlu1 %2389, %v686_v0   ;;  %1128 = vperm.xlu0 %2388, %v689_v1   ;;  %v618_v0 = vadd.f32 %v617_v52, %v581_v55 }
  0xa6   : > { %958 = vperm.xlu1 %2389, %v723_v2   ;;  %1138 = vperm.xlu0 %2388, %v691_v3   ;;  %v2795_v3 = vmul.f32 0.25, %v613_v54 }
  0xa8   : > { %v1628_v20 = vmul.f32 %v2781_v53, %v2795_v3 }
  0xaa   : > { %863 = vperm.xlu1 %2389, %v708_v5   ;;  %v597_v5 = vld [vmem:[%s2625_s21 + $0x190] sm:$0xff] }
  0xab   : > { %v619_v18 = vadd.f32 %v618_v0, %v597_v5 }
  0xad   : > { %v2814_v31 = vmul.f32 0.25, %v619_v18 }
  0xae   : > { %1123 = vperm.xlu1 %2389, %v688_v6  }
  0xaf   : > { %3582 = vst [vmem:[#allocation5_spill] sm:$0xff] %v2814_v31  ;;  %v1630_v38 = vmul.f32 %v2781_v53, %v2814_v31 }
  0xb2   : > { %968 = vperm.xlu1 %2389, %v725_v7   ;;  %v2798_v7 = vmul.f32 0.25, %v616_v58 }
  0xb4   : > { %v1629_v23 = vmul.f32 %v2781_v53, %v2798_v7 }
  0xb6   : > { %1133 = vperm.xlu1 %2389, %v690_v8  }
  0xc1   : > { %v492_v9 = vpop.xlane.xlu0 %491 }
  0xc2   : > { %v493_v10 = vrot.slane %v492_v9, 4  ;;  %v2748_v11 = vpop.xlane.xlu1 %514 }
  0xc4   : > { %v494_v14 = vadd.f32 %v493_v10, %v492_v9  ;;  %v624_v9 = vadd.f32 %v623_v59, %v583_v62 }
  0xc5   : > { %v2750_v15 = vpop.xlane.xlu0 %506 }
  0xc6   : > { %v2752_v16 = vpop.xlane.xlu1 %777  ;;  %v495_v17 = vrot.slane %v494_v14, 2 }
  0xc8   : > { %v496_v25 = vadd.f32 %v495_v17, %v494_v14  ;;  %v550_v14 = vld [vmem:[%s2625_s21 + $0x18] sm:$0xff] }
  0xc9   : > { %v2759_v33 = vpop.xlane.xlu0 %764  ;;  %v566_v17 = vld [vmem:[%s2625_s21 + $0x98] sm:$0xff] }
  0xca   : > { %v799_v27 = vpop.permute.xlu1 %798  ;;  %v497_v28 = vrot.slane %v496_v25, 1 }
  0xcb   : > { %v876_v60 = vmul.f32 %v2771_v47, %v799_v27 }
  0xcc   : > { %v498_v35 = vadd.f32 %v497_v28, %v496_v25  ;;  %v625_v25 = vadd.f32 %v624_v9, %v599_v13  ;;  %v620_v28 = vadd.f32 %v566_v17, %v550_v14 }
  0xce   : > { %v894_v43 = vpop.permute.xlu1 %893  ;;  %2319 = vpush %v498_v35  ;;  %v2820_v39 = vmul.f32 0.25, %v625_v25 }
  0xcf   : > { %v975_v56 = vmul.f32 %v2767_v42, %v894_v43  ;;  %v621_v43 = vadd.f32 %v620_v28, %v582_v30 }
  0xd0   : > { %v1632_v49 = vmul.f32 %v2781_v53, %v2820_v39 }
  0xd1   : > { %v794_v4 = vpop.permute.xlu0 %793 }
  0xd2   : > { %v899_v57 = vpop.permute.xlu1 %898  ;;  %v875_v12 = vmul.f32 %v2771_v47, %v794_v4  ;;  %v622_v4 = vadd.f32 %v621_v43, %v598_v44  ;;  %v779_v44 = vrot.slane %v2752_v16, 4 }
  0xd3   : > { %v976_v61 = vmul.f32 %v2767_v42, %v899_v57 }
  0xd4   : > { %v2789_v63 = vadd.f32 %v975_v56, %v875_v12  ;;  %v2837_v12 = vmul.f32 0.25, %v622_v4 }
  0xd5   : > { %v2791_v1 = vadd.f32 %v976_v61, %v876_v60  ;;  %v2793_v2 = vpop.permute.xlu0 %1068 }
  0xd6   : > { %v804_v6 = vpop.permute.xlu1 %803  ;;  %v1013_v8 = vmul.f32 %v2781_v53, %v2789_v63  ;;  %v1631_v62 = vmul.f32 %v2781_v53, %v2837_v12 }
  0xd7   : > { %v1014_v10 = vmul.f32 %v2781_v53, %v2791_v1  ;;  %v877_v26 = vmul.f32 %v2771_v47, %v804_v6  ;;  %v1142_v57 = vmul.f32 %v2793_v2, %v2791_v1 }
  0xd9   : > { %1031 = vadd.xlane.f32.xlu0 %v1014_v10  ;;  %v914_v19 = vpop.permute.xlu0 %913 }
  0xda   : > { %v904_v22 = vpop.permute.xlu1 %903  ;;  %1029 = vadd.xlane.f32.xlu1 %v1013_v8  ;;  %v979_v5 = vmul.f32 %v2767_v42, %v914_v19 }
  0xdb   : > { %v977_v27 = vmul.f32 %v2767_v42, %v904_v22 }
  0xdd   : > { %v2816_v32 = vadd.f32 %v977_v27, %v877_v26  ;;  %1644 = vadd.xlane.f32.xlu0 %v1628_v20  ;;  %v819_v34 = vpop.permute.xlu0 %818 }
  0xde   : > { %v809_v35 = vpop.permute.xlu1 %808  ;;  %1646 = vadd.xlane.f32.xlu1 %v1629_v23  ;;  %v880_v20 = vmul.f32 %v2771_v47, %v819_v34  ;;  %v766_v34 = vrot.slane %v2759_v33, 4 }
  0xdf   : > { %3583 = vst [vmem:[#allocation6_spill] sm:$0xff] %v2816_v32  ;;  %v1015_v41 = vmul.f32 %v2781_v53, %v2816_v32  ;;  %v878_v50 = vmul.f32 %v2771_v47, %v809_v35 }
  0xe1   : > { %1033 = vadd.xlane.f32.xlu0 %v1015_v41  ;;  %v2825_v45 = vpop.permute.xlu0 %1078 }
  0xe2   : > { %v909_v48 = vpop.permute.xlu1 %908  ;;  %1648 = vadd.xlane.f32.xlu1 %v1630_v38 }
  0xe3   : > { %v978_v52 = vmul.f32 %v2767_v42, %v909_v48 }
  0xe5   : > { %v2831_v54 = vadd.f32 %v978_v52, %v878_v50  ;;  %v924_v55 = vpop.permute.xlu0 %923 }
  0xe6   : > { %v2833_v56 = vpop.permute.xlu1 %1063  ;;  %1652 = vadd.xlane.f32.xlu1 %v1632_v49  ;;  %v981_v27 = vmul.f32 %v2767_v42, %v924_v55  ;;  %v767_v49 = vadd.f32 %v766_v34, %v2759_v33  ;;  %v780_v55 = vadd.f32 %v779_v44, %v2752_v16  ;;  %v554_v34 = vld [vmem:[%s2625_s21 + $0x38] sm:$0xff] }
  0xe7   : > { %v1141_v58 = vmul.f32 %v2833_v56, %v2789_v63  ;;  %v1016_v59 = vmul.f32 %v2781_v53, %v2831_v54 }
  0xe9   : > { %v1157_v60 = vadd.f32 %v1142_v57, %v1141_v58  ;;  %1035 = vadd.xlane.f32.xlu0 %v1016_v59  ;;  %v829_v61 = vpop.permute.xlu0 %828 }
  0xea   : > { %v814_v0 = vpop.permute.xlu1 %813  ;;  %v882_v52 = vmul.f32 %v2771_v47, %v829_v61 }
  0xeb   : > { %v879_v6 = vmul.f32 %v2771_v47, %v814_v0  ;;  %v781_v0 = vrot.slane %v780_v55, 2 }
  0xed   : > { %v2847_v8 = vadd.f32 %v979_v5, %v879_v6  ;;  %1650 = vadd.xlane.f32.xlu0 %v1631_v62  ;;  %v2849_v9 = vpop.permute.xlu0 %1088  ;;  %v552_v5 = vld [vmem:[%s2625_s21 + $0x28] sm:$0xff] }
  0xee   : > { %v2851_v10 = vpop.permute.xlu1 %1073  ;;  %v568_v6 = vld [vmem:[%s2625_s21 + $0xa8] sm:$0xff] }
  0xef   : > { %v1143_v13 = vmul.f32 %v2851_v10, %v2816_v32  ;;  %v1017_v14 = vmul.f32 %v2781_v53, %v2847_v8 }
  0xf1   : > { %v2857_v17 = vadd.f32 %v1157_v60, %v1143_v13  ;;  %1037 = vadd.xlane.f32.xlu0 %v1017_v14  ;;  %v934_v18 = vpop.permute.xlu0 %933  ;;  %v768_v60 = vrot.slane %v767_v49, 2  ;;  %v553_v14 = vld [vmem:[%s2625_s21 + $0x30] sm:$0xff] }
  0xf2   : > { %v919_v19 = vpop.permute.xlu1 %918  ;;  %v983_v61 = vmul.f32 %v2767_v42, %v934_v18 }
  0xf3   : > { %v980_v22 = vmul.f32 %v2767_v42, %v919_v19  ;;  %v569_v19 = vld [vmem:[%s2625_s21 + $0xb0] sm:$0xff]  ;;  %v769_v18 = vadd.f32 %v768_v60, %v767_v49  ;;  %v555_v60 = vld [vmem:[%s2625_s21 + $0x40] sm:$0xff] }
  0xf4   : > { %v629_v44 = vadd.f32 %v569_v19, %v553_v14  ;;  %v586_v14 = vld [vmem:[%s2625_s21 + $0x138] sm:$0xff] }
  0xf5   : > { %v2861_v23 = vadd.f32 %v980_v22, %v880_v20  ;;  %v839_v25 = vpop.permute.xlu0 %838  ;;  %v770_v49 = vrot.slane %v769_v18, 1 }
  0xf6   : > { %v824_v26 = vpop.permute.xlu1 %823 }
  0xf7   : > { %3584 = vst [vmem:[#allocation7_spill] sm:$0xff] %v2861_v23  ;;  %v881_v28 = vmul.f32 %v2771_v47, %v824_v26  ;;  %v1018_v30 = vmul.f32 %v2781_v53, %v2861_v23  ;;  %v626_v26 = vadd.f32 %v568_v6, %v552_v5  ;;  %v1678_v5 = vmul.f32 %v2851_v10, %v2814_v31  ;;  %v600_v6 = vld [vmem:[%s2625_s21 + $0x1a8] sm:$0xff] }
  0xf9   : > { %v2867_v35 = vadd.f32 %v981_v27, %v881_v28  ;;  %1039 = vadd.xlane.f32.xlu0 %v1018_v30  ;;  %v2869_v38 = vpop.permute.xlu0 %1098  ;;  %v782_v28 = vadd.f32 %v781_v0, %v780_v55  ;;  %v584_v30 = vld [vmem:[%s2625_s21 + $0x128] sm:$0xff]  ;;  %v571_v55 = vld [vmem:[%s2625_s21 + $0xc0] sm:$0xff]  ;;  %v1677_v0 = vmul.f32 %v2793_v2, %v2798_v7 }
  0xfa   : > { %v2872_v41 = vpop.permute.xlu1 %1083 }
  0xfb   : > { %3585 = vst [vmem:[#allocation8_spill] sm:$0xff] %v2867_v35  ;;  %v1019_v43 = vmul.f32 %v2781_v53, %v2867_v35 }
  0xfd   : > { %1041 = vadd.xlane.f32.xlu0 %v1019_v43  ;;  %v944_v48 = vpop.permute.xlu0 %943  ;;  %v570_v43 = vld [vmem:[%s2625_s21 + $0xb8] sm:$0xff] }
  0xfe   : > { %v929_v50 = vpop.permute.xlu1 %928 }
  0xff   : > { %v982_v4 = vmul.f32 %v2767_v42, %v929_v50  ;;  %s2320_s29 = spop %2319  ;;  %v585_v50 = vld [vmem:[%s2625_s21 + $0x130] sm:$0xff] }
 0x100   : > { %s500_s15 = smax.f32 %s2495_s30, %s2320_s29  ;;  %v630_v19 = vadd.f32 %v629_v44, %v585_v50  ;;  %v587_v50 = vld [vmem:[%s2625_s21 + $0x140] sm:$0xff] }
 0x101   : > { %v2882_v57 = vadd.f32 %v982_v4, %v882_v52  ;;  %v501_v58 = vstv %s500_s15  ;;  %v2884_v59 = vpop.permute.xlu0 %848  ;;  %v1676_v4 = vmul.f32 %v2833_v56, %v2795_v3 }
 0x102   : > { %2394 = vrcp.f32 %v501_v58  ;;  %v834_v33 = vpop.permute.xlu1 %833  ;;  %v884_v58 = vmul.f32 %v2771_v47, %v839_v25  ;;  %v601_v25 = vld [vmem:[%s2625_s21 + $0x1b0] sm:$0xff] }
 0x103   : > { %3586 = vst [vmem:[#allocation9_spill] sm:$0xff] %v2882_v57  ;;  %v883_v62 = vmul.f32 %v2771_v47, %v834_v33  ;;  %v1020_v16 = vmul.f32 %v2781_v53, %v2882_v57  ;;  %v1692_v2 = vadd.f32 %v1677_v0, %v1676_v4  ;;  %v572_v4 = vld [vmem:[%s2625_s21 + $0xc8] sm:$0xff]  ;;  %v573_v0 = vld [vmem:[%s2625_s21 + $0xd0] sm:$0xff] }
 0x105   : > { %v2892_v13 = vadd.f32 %v983_v61, %v883_v62  ;;  %1043 = vadd.xlane.f32.xlu0 %v1020_v16  ;;  %v2900_v27 = vpop.permute.xlu0 %1108  ;;  %v627_v61 = vadd.f32 %v626_v26, %v584_v30  ;;  %v632_v62 = vadd.f32 %v570_v43, %v554_v34  ;;  %v783_v16 = vrot.slane %v782_v28, 1 }
 0x106   : > { %v2896_v20 = vpop.permute.xlu1 %1093  ;;  %v771_v26 = vadd.f32 %v770_v49, %v769_v18  ;;  %v635_v30 = vadd.f32 %v571_v55, %v555_v60  ;;  %v985_v43 = vmul.f32 %v2767_v42, %v944_v48  ;;  %v1693_v31 = vadd.f32 %v1692_v2, %v1678_v5  ;;  %v602_v18 = vld [vmem:[%s2625_s21 + $0x1b8] sm:$0xff]  ;;  %v556_v60 = vld [vmem:[%s2625_s21 + $0x48] sm:$0xff] }
 0x107   : > { %3587 = vst [vmem:[#allocation10_spill] sm:$0xff] %v2892_v13  ;;  %v1021_v22 = vmul.f32 %v2781_v53, %v2892_v13  ;;  %v784_v32 = vadd.f32 %v783_v16, %v782_v28  ;;  %v631_v49 = vadd.f32 %v630_v19, %v601_v25  ;;  %v1144_v48 = vmul.f32 %v2825_v45, %v2831_v54  ;;  %v557_v16 = vld [vmem:[%s2625_s21 + $0x50] sm:$0xff] }
 0x108   : > { %v1679_v5 = vmul.f32 %v2825_v45, %v2837_v12  ;;  %v641_v2 = vadd.f32 %v573_v0, %v557_v16 }
 0x109   : > { %1045 = vadd.xlane.f32.xlu0 %v1021_v22  ;;  %v2921_v22 = vpop.permute.xlu0 %953 }
 0x10a   : > { %v939_v52 = vpop.permute.xlu1 %938  ;;  %v1694_v45 = vadd.f32 %v1693_v31, %v1679_v5  ;;  %v575_v31 = vld [vmem:[%s2625_s21 + $0xe0] sm:$0xff] }
 0x10b   : > { %v984_v33 = vmul.f32 %v2767_v42, %v939_v52 }
 0x10d   : > { %v2918_v56 = vadd.f32 %v984_v33, %v884_v58  ;;  %v628_v58 = vadd.f32 %v627_v61, %v600_v6  ;;  %v633_v33 = vadd.f32 %v632_v62, %v586_v14  ;;  %v1145_v61 = vmul.f32 %v2872_v41, %v2847_v8  ;;  %v603_v14 = vld [vmem:[%s2625_s21 + $0x1c0] sm:$0xff] }
 0x10e   : > { %v844_v52 = vpop.permute.xlu1 %843  ;;  %v636_v62 = vadd.f32 %v635_v30, %v587_v50  ;;  %v1680_v6 = vmul.f32 %v2872_v41, %v2820_v39  ;;  %v588_v41 = vld [vmem:[%s2625_s21 + $0x148] sm:$0xff] }
 0x10f   : > { %v2395_v34 = vpop.eup %2394  ;;  %v885_v10 = vmul.f32 %v2771_v47, %v844_v52  ;;  %v1022_v44 = vmul.f32 %v2781_v53, %v2918_v56  ;;  %v634_v25 = vadd.f32 %v633_v33, %v602_v18  ;;  %v638_v52 = vadd.f32 %v572_v4, %v556_v60  ;;  %v574_v60 = vld [vmem:[%s2625_s21 + $0xd8] sm:$0xff]  ;;  %v559_v4 = vld [vmem:[%s2625_s21 + $0x60] sm:$0xff] }
 0x110   : > { %2321 = vpush %v2395_v34  ;;  %v2951_v30 = vmul.f32 0.25, %v628_v58  ;;  %v2953_v34 = vmul.f32 0.25, %v631_v49  ;;  %v1695_v33 = vadd.f32 %v1694_v45, %v1680_v6  ;;  %v886_v18 = vmul.f32 %v2771_v47, %v2884_v59 }
 0x111   : > { %v2931_v55 = vadd.f32 %v985_v43, %v885_v10  ;;  %2323 = vpush %v771_v26  ;;  %1047 = vadd.xlane.f32.xlu0 %v1022_v44  ;;  %v2949_v26 = vpop.permute.xlu0 %858  ;;  %v637_v10 = vadd.f32 %v636_v62, %v603_v14  ;;  %v558_v44 = vld [vmem:[%s2625_s21 + $0x58] sm:$0xff]  ;;  %v1146_v49 = vmul.f32 %v2849_v9, %v2861_v23  ;;  %v604_v14 = vld [vmem:[%s2625_s21 + $0x1c8] sm:$0xff] }
 0x112   : > { %2325 = vpush %v784_v32  ;;  %v2937_v28 = vpop.permute.xlu1 %1103  ;;  %v1159_v32 = vadd.f32 %v2857_v17, %v1144_v48  ;;  %v589_v17 = vld [vmem:[%s2625_s21 + $0x150] sm:$0xff]  ;;  %v2966_v48 = vmul.f32 0.25, %v634_v25  ;;  %v639_v62 = vadd.f32 %v638_v52, %v588_v41  ;;  %v1681_v16 = vmul.f32 %v2849_v9, %v2951_v30 }
 0x113   : > { %v1023_v19 = vmul.f32 %v2781_v53, %v2931_v55  ;;  %v1682_v59 = vmul.f32 %v2896_v20, %v2953_v34  ;;  %v642_v5 = vadd.f32 %v641_v2, %v589_v17  ;;  %v605_v52 = vld [vmem:[%s2625_s21 + $0x1d0] sm:$0xff]  ;;  %v647_v41 = vadd.f32 %v575_v31, %v559_v4  ;;  %v576_v4 = vld [vmem:[%s2625_s21 + $0xe8] sm:$0xff] }
 0x114   : > { %v1160_v43 = vadd.f32 %v1159_v32, %v1145_v61  ;;  %v1147_v61 = vmul.f32 %v2896_v20, %v2867_v35  ;;  %v644_v32 = vadd.f32 %v574_v60, %v558_v44  ;;  %v1696_v9 = vadd.f32 %v1695_v33, %v1681_v16 }
 0x115   : > { %1049 = vadd.xlane.f32.xlu0 %v1023_v19  ;;  %v2977_v19 = vmul.f32 0.25, %v637_v10  ;;  %v2979_v25 = vpop.permute.xlu0 %1118  ;;  %v987_v20 = vmul.f32 %v2767_v42, %v2921_v22  ;;  %v591_v10 = vld [vmem:[%s2625_s21 + $0x160] sm:$0xff]  ;;  %v643_v33 = vadd.f32 %v642_v5, %v605_v52  ;;  %v1148_v22 = vmul.f32 %v2869_v38, %v2882_v57  ;;  %v577_v52 = vld [vmem:[%s2625_s21 + $0xf0] sm:$0xff]  ;;  %v578_v57 = vld [vmem:[%s2625_s21 + $0xf8] sm:$0xff] }
 0x116   : > { %v949_v50 = vpop.permute.xlu1 %948  ;;  %v1161_v6 = vadd.f32 %v1160_v43, %v1146_v49  ;;  %v1697_v17 = vadd.f32 %v1696_v9, %v1682_v59  ;;  %v1149_v31 = vmul.f32 %v2937_v28, %v2892_v13  ;;  %v606_v49 = vld [vmem:[%s2625_s21 + $0x1d8] sm:$0xff]  ;;  %v648_v59 = vadd.f32 %v647_v41, %v591_v10 }
 0x117   : > { %v986_v58 = vmul.f32 %v2767_v42, %v949_v50  ;;  %v590_v50 = vld [vmem:[%s2625_s21 + $0x158] sm:$0xff] }
 0x118   : > { %v1162_v44 = vadd.f32 %v1161_v6, %v1147_v61  ;;  %v645_v61 = vadd.f32 %v644_v32, %v590_v50  ;;  %v1684_v6 = vmul.f32 %v2937_v28, %v2977_v19  ;;  %v3009_v50 = vmul.f32 0.25, %v643_v33  ;;  %v562_v13 = vld [vmem:[%s2625_s21 + $0x78] sm:$0xff] }
 0x119   : > { %v2974_v0 = vadd.f32 %v986_v58, %v886_v18  ;;  %v640_v18 = vadd.f32 %v639_v62, %v604_v14  ;;  %v560_v58 = vld [vmem:[%s2625_s21 + $0x68] sm:$0xff]  ;;  %v1683_v62 = vmul.f32 %v2869_v38, %v2966_v48  ;;  %v607_v14 = vld [vmem:[%s2625_s21 + $0x1e0] sm:$0xff]  ;;  %v1150_v33 = vmul.f32 %v2900_v27, %v2918_v56 }
 0x11a   : > { %v854_v45 = vpop.permute.xlu1 %853  ;;  %v1163_v9 = vadd.f32 %v1162_v44, %v1148_v22  ;;  %v592_v38 = vld [vmem:[%s2625_s21 + $0x168] sm:$0xff]  ;;  %v649_v35 = vadd.f32 %v648_v59, %v607_v14  ;;  %v888_v44 = vmul.f32 %v2771_v47, %v2949_v26  ;;  %v656_v59 = vadd.f32 %v578_v57, %v562_v13  ;;  %v594_v14 = vld [vmem:[%s2625_s21 + $0x178] sm:$0xff]  ;;  %v609_v57 = vld [vmem:[%s2625_s21 + $0x1f0] sm:$0xff] }
 0x11b   : > { %v887_v2 = vmul.f32 %v2771_v47, %v854_v45  ;;  %v1024_v43 = vmul.f32 %v2781_v53, %v2974_v0  ;;  %v561_v45 = vld [vmem:[%s2625_s21 + $0x70] sm:$0xff]  ;;  %v3007_v32 = vmul.f32 0.25, %v640_v18  ;;  %v1698_v41 = vadd.f32 %v1697_v17, %v1683_v62 }
 0x11c   : > { %v1164_v28 = vadd.f32 %v1163_v9, %v1149_v31  ;;  %v653_v23 = vadd.f32 %v577_v52, %v561_v45  ;;  %v593_v17 = vld [vmem:[%s2625_s21 + $0x170] sm:$0xff]  ;;  %v3030_v52 = vmul.f32 0.25, %v649_v35  ;;  %v1152_v35 = vmul.f32 %v2979_v25, %v2974_v0 }
 0x11d   : > { %v2989_v60 = vadd.f32 %v987_v20, %v887_v2  ;;  %1051 = vadd.xlane.f32.xlu0 %v1024_v43  ;;  %v964_v20 = vpop.permute.xlu0 %963  ;;  %v650_v2 = vadd.f32 %v576_v4, %v560_v58  ;;  %v646_v43 = vadd.f32 %v645_v61, %v606_v49  ;;  %v1699_v58 = vadd.f32 %v1698_v41, %v1684_v6 }
 0x11e   : > { %v1114_v16 = vpop.permute.xlu1 %1113  ;;  %v1685_v31 = vmul.f32 %v2900_v27, %v3007_v32  ;;  %v1165_v6 = vadd.f32 %v1164_v28, %v1150_v33  ;;  %3590 = vst [vmem:[#allocation13_spill] sm:$0xff] %v3030_v52  ;;  %v654_v9 = vadd.f32 %v653_v23, %v593_v17  ;;  %v657_v28 = vadd.f32 %v656_v59, %v594_v14  ;;  %v610_v23 = vld [vmem:[%s2625_s21 + $0x1f8] sm:$0xff] }
 0x11f   : > { %3588 = vst [vmem:[#allocation11_spill] sm:$0xff] %v2989_v60  ;;  %v1025_v5 = vmul.f32 %v2781_v53, %v2989_v60  ;;  %v1151_v4 = vmul.f32 %v1114_v16, %v2931_v55  ;;  %v651_v22 = vadd.f32 %v650_v2, %v592_v38  ;;  %v1686_v49 = vmul.f32 %v1114_v16, %v3009_v50 }
 0x120   : > { %v3026_v26 = vmul.f32 0.25, %v646_v43  ;;  %v989_v2 = vmul.f32 %v2767_v42, %v964_v20  ;;  %v1700_v27 = vadd.f32 %v1699_v58, %v1685_v31  ;;  %v655_v20 = vadd.f32 %v654_v9, %v609_v57 }
 0x121   : > { %1053 = vadd.xlane.f32.xlu0 %v1025_v5  ;;  %v869_v62 = vpop.permute.xlu0 %868  ;;  %v608_v5 = vld [vmem:[%s2625_s21 + $0x1e8] sm:$0xff]  ;;  %v1166_v13 = vadd.f32 %v1165_v6, %v1151_v4 }
 0x122   : > { %v959_v10 = vpop.permute.xlu1 %958  ;;  %v1701_v38 = vadd.f32 %v1700_v27, %v1686_v49  ;;  %v652_v43 = vadd.f32 %v651_v22, %v608_v5  ;;  %v1687_v58 = vmul.f32 %v2979_v25, %v3026_v26  ;;  %v658_v49 = vadd.f32 %v657_v28, %v610_v23 }
 0x123   : > { %v988_v18 = vmul.f32 %v2767_v42, %v959_v10  ;;  %v1167_v22 = vadd.f32 %v1166_v13, %v1152_v35  ;;  %v890_v14 = vmul.f32 %v2771_v47, %v869_v62  ;;  %v3052_v9 = vmul.f32 0.25, %v655_v20 }
 0x124   : > { %v3048_v31 = vmul.f32 0.25, %v652_v43  ;;  %v1702_v59 = vadd.f32 %v1701_v38, %v1687_v58 }
 0x125   : > { %v3024_v61 = vadd.f32 %v988_v18, %v888_v44  ;;  %v1129_v4 = vpop.permute.xlu0 %1128  ;;  %3593 = vst [vmem:[#allocation16_spill] sm:$0xff] %v3052_v9 }
 0x126   : > { %v864_v45 = vpop.permute.xlu1 %863  ;;  %3592 = vst [vmem:[#allocation15_spill] sm:$0xff] %v3048_v31  ;;  %v1689_v27 = vmul.f32 %v1129_v4, %v3048_v31 }
 0x127   : > { %3589 = vst [vmem:[#allocation12_spill] sm:$0xff] %v3024_v61  ;;  %v889_v41 = vmul.f32 %v2771_v47, %v864_v45  ;;  %v1026_v16 = vmul.f32 %v2781_v53, %v3024_v61 }
 0x129   : > { %v3037_v10 = vadd.f32 %v989_v2, %v889_v41  ;;  %1055 = vadd.xlane.f32.xlu0 %v1026_v16  ;;  %v1154_v2 = vmul.f32 %v1129_v4, %v3024_v61  ;;  %v3056_v41 = vmul.f32 0.25, %v658_v49  ;;  %v1139_v57 = vpop.permute.xlu0 %1138 }
 0x12a   : > { %v1124_v44 = vpop.permute.xlu1 %1123 }
 0x12b   : > { %3591 = vst [vmem:[#allocation14_spill] sm:$0xff] %v3037_v10  ;;  %v1153_v18 = vmul.f32 %v1124_v44, %v2989_v60  ;;  %v1688_v17 = vmul.f32 %v1124_v44, %v3030_v52  ;;  %v1027_v33 = vmul.f32 %v2781_v53, %v3037_v10  ;;  %3594 = vst [vmem:[#allocation17_spill] sm:$0xff] %v3056_v41 }
 0x12c   : > { %v1691_v28 = vmul.f32 %v1139_v57, %v3056_v41 }
 0x12d   : > { %1057 = vadd.xlane.f32.xlu0 %v1027_v33  ;;  %v1168_v6 = vadd.f32 %v1167_v22, %v1153_v18  ;;  %v1703_v45 = vadd.f32 %v1702_v59, %v1688_v17 }
 0x12e   : > { %v969_v5 = vpop.permute.xlu1 %968 }
 0x12f   : > { %v990_v25 = vmul.f32 %v2767_v42, %v969_v5  ;;  %v1169_v38 = vadd.f32 %v1168_v6, %v1154_v2  ;;  %v1704_v62 = vadd.f32 %v1703_v45, %v1689_v27 }
 0x131   : > { %v3058_v16 = vadd.f32 %v990_v25, %v890_v14 }
 0x132   : > { %v1134_v13 = vpop.permute.xlu1 %1133 }
 0x133   : > { %3595 = vst [vmem:[#allocation18_spill] sm:$0xff] %v3058_v16  ;;  %v1155_v43 = vmul.f32 %v1134_v13, %v3037_v10  ;;  %v1690_v47 = vmul.f32 %v1134_v13, %v3052_v9  ;;  %v1028_v42 = vmul.f32 %v2781_v53, %v3058_v16  ;;  %v1156_v35 = vmul.f32 %v1139_v57, %v3058_v16 }
 0x135   : > { %v1170_v23 = vadd.f32 %v1169_v38, %v1155_v43  ;;  %v1705_v44 = vadd.f32 %v1704_v62, %v1690_v47  ;;  %1059 = vadd.xlane.f32.xlu0 %v1028_v42  ;;  %v729_v47 = vmul.f32 %v2694_v29, %v2694_v29  ;;  %v1633_v29 = vmul.f32 %v2781_v53, %v2951_v30 }
 0x137   : > { %v1171_v20 = vadd.f32 %v1170_v23, %v1156_v35  ;;  %v1706_v58 = vadd.f32 %v1705_v44, %v1691_v28  ;;  %v1634_v28 = vmul.f32 %v2781_v53, %v2953_v34  ;;  %v1635_v23 = vmul.f32 %v2781_v53, %v2966_v48 }
 0x139   : > { %v1172_v18 = vrot.slane %v1171_v20, 4  ;;  %v1707_v17 = vrot.slane %v1706_v58, 4 }
 0x13b   : > { %v1708_v33 = vadd.f32 %v1707_v17, %v1706_v58  ;;  %v1173_v4 = vadd.f32 %v1172_v18, %v1171_v20 }
 0x13d   : > { %v1709_v22 = vrot.slane %v1708_v33, 2  ;;  %v1174_v49 = vrot.slane %v1173_v4, 2 }
 0x13f   : > { %v1710_v59 = vadd.f32 %v1709_v22, %v1708_v33  ;;  %v1175_v6 = vadd.f32 %v1174_v49, %v1173_v4  ;;  %v1636_v33 = vmul.f32 %v2781_v53, %v2977_v19  ;;  %v2426_v22 = vld [vmem:[%s2639_s26] ss:$0 sm:$0xff] }
 0x141   : > { %s2322_s21 = spop %2321  ;;  %v1711_v5 = vrot.slane %v1710_v59, 1  ;;  %v1176_v14 = vrot.slane %v1175_v6, 1 }
 0x142   : > { %v3066_v45 = vstv %s2322_s21  ;;  %s2324_s16 = spop %2323 }
 0x143   : > { %v509_v25 = vmul.f32 %v3066_v45, %v2750_v15  ;;  %v516_v2 = vmul.f32 %v2748_v11, %v3066_v45  ;;  %s2326_s20 = spop %2325  ;;  %v3072_v27 = vadd.f32 %v1711_v5, %v1710_v59  ;;  %v3074_v57 = vadd.f32 %v1176_v14, %v1175_v6 }
 0x144   : > { %s786_s12 = sadd.f32 %s2326_s20, %s2324_s16  ;;  %v1637_v59 = vmul.f32 %v2781_v53, %v3007_v32  ;;  %s481_s16 = scalar_lea.vmem %s3561_s8, %s2642_s27 }
 0x145   : > { %v510_v13 = vmax.f32 %v509_v25, 1e-10  ;;  %v517_v38 = vmax.f32 %v516_v2, 1e-10  ;;  %v1713_v43 = vmul.f32 %v3072_v27, %v2777_v51  ;;  %v1178_v62 = vmul.f32 %v3074_v57, %v2777_v51  ;;  %v2409_v2 = vld [vmem:[%s2690_s25 + $0x8] sm:$0xff] }
 0x146   : > { %s787_s24 = smax.f32 %s2495_s30, %s786_s12 }
 0x147   : > { %2396 = vrcp.f32 %v510_v13  ;;  %v788_v15 = vstv %s787_s24  ;;  %v1714_v11 = vsel %vm489_vm0, %v1713_v43, 0.0  ;;  %v1179_v42 = vsel %vm489_vm0, %v1178_v62, 0.0 }
 0x148   : > { %2398 = vrcp.f32 %v517_v38  ;;  %1715 = vadd.xlane.f32.xlu1 %v1714_v11  ;;  %v745_v13 = vmul.f32 %v2409_v2, %v729_v47  ;;  %v1640_v11 = vmul.f32 %v2781_v53, %v3030_v52  ;;  %v728_v62 = vmul.f32 %v2704_v36, %v2704_v36 }
 0x149   : > { %2400 = vrcp.f32 %v788_v15 }
 0x14b   : > { %1433 = vperm.xlu0 %2388, %v729_v47  }
 0x14c   : > { %1180 = vadd.xlane.f32.xlu1 %v1179_v42  ;;  %v730_v42 = vmul.f32 %v2711_v40, %v2711_v40  ;;  %v1643_v40 = vmul.f32 %v2781_v53, %v3056_v41 }
 0x150   : > { %1654 = vadd.xlane.f32.xlu1 %v1633_v29  ;;  %v1641_v29 = vmul.f32 %v2781_v53, %v3048_v31 }
 0x154   : > { %v2397_v35 = vpop.eup %2396  ;;  %1656 = vadd.xlane.f32.xlu1 %v1634_v28  ;;  %v2410_v28 = vld [vmem:[%s2690_s25] sm:$0xff] }
 0x155   : > { %v2399_v44 = vpop.eup %2398  ;;  %v512_v20 = vmul.f32 0.5, %v2397_v35  ;;  %v744_v35 = vmul.f32 %v2410_v28, %v728_v62 }
 0x156   : > { %v2401_v58 = vpop.eup %2400  ;;  %v519_v18 = vmul.f32 0.5, %v2399_v44  ;;  %v2411_v44 = vld [vmem:[%s2690_s25 + $0x18] sm:$0xff] }
 0x157   : > { %2327 = vpush %v2401_v58  ;;  %v526_v17 = vmul.f32 %v2682_v24, %v512_v20  ;;  %v1638_v24 = vmul.f32 %v2781_v53, %v3009_v50  ;;  %v731_v20 = vmul.f32 %v2411_v44, %v2411_v44 }
 0x158   : > { %1658 = vadd.xlane.f32.xlu1 %v1635_v23  ;;  %v531_v4 = vmul.f32 %v2674_v21, %v519_v18  ;;  %v1639_v21 = vmul.f32 %v2781_v53, %v3026_v26  ;;  %v1642_v23 = vmul.f32 %v2781_v53, %v3052_v9  ;;  %v2413_v53 = vld [vmem:[%s2690_s25 + $0x28] sm:$0xff] }
 0x159   : > { %v747_v58 = vmul.f32 %v2411_v44, %v731_v20  ;;  %v733_v2 = vmul.f32 %v2413_v53, %v2413_v53 }
 0x15a   : > { %v532_v49 = vsub.f32 %v526_v17, %v531_v4 }
 0x15c   : > { %1660 = vadd.xlane.f32.xlu1 %v1636_v33  ;;  %v533_v6 = vmul.f32 0.5, %v532_v49  ;;  %v732_v33 = vmul.f32 %v2720_v46, %v2720_v46  ;;  %v2412_v49 = vld [vmem:[%s2690_s25 + $0x20] sm:$0xff]  ;;  %v2414_v46 = vld [vmem:[%s2690_s25 + $0x10] sm:$0xff] }
 0x15e   : > { %v3098_v5 = vmul.f32 %v2426_v22, %v533_v6 }
 0x160   : > { %1662 = vadd.xlane.f32.xlu1 %v1637_v59  ;;  %v748_v59 = vmul.f32 %v2412_v49, %v732_v33 }
 0x162   : > { %v3102_v14 = vpop.xlane.xlu0 %1031 }
 0x163   : > { %v1030_v25 = vpop.xlane.xlu1 %1029 }
 0x164   : > { %1664 = vadd.xlane.f32.xlu1 %v1638_v24  ;;  %v1307_v4 = vmul.f32 %v1030_v25, %v744_v35  ;;  %v746_v25 = vmul.f32 %v2414_v46, %v730_v42 }
 0x166   : > { %v1645_v43 = vpop.xlane.xlu0 %1644 }
 0x167   : > { %v1647_v38 = vpop.xlane.xlu1 %1646  ;;  %v1756_v28 = vmul.f32 %v1645_v43, %v744_v35  ;;  %v1308_v43 = vmul.f32 %v3102_v14, %v745_v13  ;;  %v726_v14 = vmul.f32 %v2777_v51, %v2777_v51 }
 0x168   : > { %v1757_v15 = vmul.f32 %v1647_v38, %v745_v13  ;;  %1666 = vadd.xlane.f32.xlu1 %v1639_v21 }
 0x16a   : > { %1779 = vperm.xlu0 %2388, %v1757_v15   ;;  %v1034_v47 = vpop.xlane.xlu0 %1033 }
 0x16b   : > { %v1649_v22 = vpop.xlane.xlu1 %1648 }
 0x16c   : > { %1668 = vadd.xlane.f32.xlu1 %v1640_v11  ;;  %v749_v11 = vmul.f32 %v2413_v53, %v733_v2  ;;  %v1758_v44 = vmul.f32 %v1649_v22, %v746_v25 }
 0x16e   : > { %1438 = vperm.xlu0 %2388, %v730_v42   ;;  %v1309_v42 = vmul.f32 %v1034_v47, %v746_v25  ;;  %v2416_v47 = vld [vmem:[%s2690_s25 + $0x38] sm:$0xff] }
 0x16f   : > { %v1653_v21 = vpop.xlane.xlu1 %1652  ;;  %v735_v49 = vmul.f32 %v2416_v47, %v2416_v47 }
 0x170   : > { %1670 = vadd.xlane.f32.xlu1 %v1641_v29  ;;  %v1760_v15 = vmul.f32 %v1653_v21, %v748_v59 }
 0x172   : > { %1213 = vperm.xlu0 %2388, %v744_v35   ;;  %v1036_v36 = vpop.xlane.xlu0 %1035 }
 0x173   : > { %v1310_v6 = vmul.f32 %v1036_v36, %v747_v58 }
 0x174   : > { %1672 = vadd.xlane.f32.xlu1 %v1642_v23 }
 0x176   : > { %v1651_v18 = vpop.xlane.xlu0 %1650 }
 0x177   : > { %v1759_v17 = vmul.f32 %v1651_v18, %v747_v58 }
 0x178   : > { %1674 = vadd.xlane.f32.xlu1 %v1643_v40 }
 0x179   : > { %1789 = vperm.xlu0 %2388, %v1759_v17  }
 0x17a   : > { %v1038_v24 = vpop.xlane.xlu0 %1037 }
 0x17b   : > { %v1311_v38 = vmul.f32 %v1038_v24, %v748_v59 }
 0x17d   : > { %1325 = vperm.xlu0 %2388, %v1307_v4   ;;  %v2415_v4 = vld [vmem:[%s2690_s25 + $0x30] sm:$0xff] }
 0x17e   : > { %v734_v22 = vmul.f32 %v2415_v4, %v2415_v4 }
 0x181   : > { %1340 = vperm.xlu0 %2388, %v1310_v6  }
 0x182   : > { %v1040_v29 = vpop.xlane.xlu0 %1039 }
 0x183   : > { %v1312_v23 = vmul.f32 %v1040_v29, %v749_v11 }
 0x185   : > { %1345 = vperm.xlu0 %2388, %v1311_v38  }
 0x186   : > { %v1042_v36 = vpop.xlane.xlu0 %1041 }
 0x188   : > { %s3218_s18 = spop %2327 }
 0x189   : > { %1428 = vperm.xlu1 %2389, %v728_v62   ;;  %1794 = vperm.xlu0 %2388, %v1760_v15  }
 0x18d   : > { %1774 = vperm.xlu1 %2389, %v1756_v28   ;;  %1350 = vperm.xlu0 %2388, %v1312_v23  }
 0x18e   : > { %v3126_v40 = vpop.xlane.xlu0 %1043 }
 0x191   : > { %1784 = vperm.xlu1 %2389, %v1758_v44  }
 0x192   : > { %v3128_v18 = vpop.xlane.xlu0 %1045 }
 0x195   : > { %1218 = vperm.xlu1 %2389, %v745_v13  }
 0x199   : > { %1443 = vperm.xlu1 %2389, %v731_v20  }
 0x19a   : > { %v3131_v62 = vpop.xlane.xlu0 %1047 }
 0x19d   : > { %1223 = vperm.xlu1 %2389, %v746_v25  }
 0x19e   : > { %v3133_v35 = vpop.xlane.xlu0 %1049 }
 0x1a1   : > { %1448 = vperm.xlu1 %2389, %v732_v33  }
 0x1a5   : > { %1330 = vperm.xlu1 %2389, %v1308_v43   ;;  %v750_v43 = vmul.f32 %v2415_v4, %v734_v22 }
 0x1a6   : > { %v3135_v17 = vpop.xlane.xlu0 %1051 }
 0x1a7   : > { %v1313_v16 = vmul.f32 %v1042_v36, %v750_v43  ;;  %v2417_v36 = vld [vmem:[%s2690_s25 + $0x40] sm:$0xff] }
 0x1a9   : > { %1335 = vperm.xlu1 %2389, %v1309_v42  }
 0x1aa   : > { %v3137_v20 = vpop.xlane.xlu0 %1053 }
 0x1ad   : > { %1228 = vperm.xlu1 %2389, %v747_v58   ;;  %v727_v58 = vmul.f32 %v726_v14, %v2777_v51 }
 0x1af   : > { %v1868_v6 = vmul.f32 %v3072_v27, %v727_v58  ;;  %v1425_v24 = vmul.f32 %v3074_v57, %v727_v58 }
 0x1b1   : > { %1453 = vperm.xlu1 %2389, %v733_v2   ;;  %v3153_v21 = vrot.slane %v1868_v6, %v2762_v37  ;;  %v3156_v53 = vrot.slane %v1425_v24, %v2762_v37 }
 0x1b2   : > { %v3140_v33 = vpop.xlane.xlu0 %1055 }
 0x1b5   : > { %1233 = vperm.xlu1 %2389, %v748_v59  }
 0x1b6   : > { %v3144_v13 = vpop.xlane.xlu0 %1057 }
 0x1b9   : > { %1458 = vperm.xlu1 %2389, %v734_v22  }
 0x1bd   : > { %1238 = vperm.xlu1 %2389, %v749_v11  }
 0x1be   : > { %v3150_v59 = vpop.xlane.xlu0 %1059 }
 0x1c1   : > { %1463 = vperm.xlu1 %2389, %v735_v49  }
 0x1c6   : > { %v3158_v2 = vpop.permute.xlu0 %1433 }
 0x1c7   : > { %v3162_v38 = vmul.f32 %v3156_v53, %v3158_v2  ;;  %v1876_v51 = vmul.f32 %v3153_v21, %v3158_v2 }
 0x1d1   : > { %v1716_v27 = vpop.xlane.xlu1 %1715 }
 0x1d2   : > { %v1717_v57 = vrot.slane %v1716_v27, 4 }
 0x1d4   : > { %v1718_v15 = vadd.f32 %v1717_v57, %v1716_v27  ;;  %v751_v57 = vmul.f32 %v2416_v47, %v735_v49 }
 0x1d5   : > { %v1181_v29 = vpop.xlane.xlu1 %1180 }
 0x1d6   : > { %v1719_v28 = vrot.slane %v1718_v15, 2  ;;  %v1182_v46 = vrot.slane %v1181_v29, 4 }
 0x1d8   : > { %v1183_v25 = vadd.f32 %v1182_v46, %v1181_v29  ;;  %v1720_v44 = vadd.f32 %v1719_v28, %v1718_v15  ;;  %v3167_v15 = vrot.slane %v726_v14, %v2762_v37  ;;  %v736_v29 = vmul.f32 %v2417_v36, %v2417_v36 }
 0x1d9   : > { %v1655_v23 = vpop.xlane.xlu1 %1654 }
 0x1da   : > { %v1184_v42 = vrot.slane %v1183_v25, 2  ;;  %v1761_v6 = vmul.f32 %v1655_v23, %v749_v11  ;;  %v1721_v41 = vrot.slane %v1720_v44, 1  ;;  %v541_v11 = vsel %vm504_vm1, %v3098_v5, 0.0 }
 0x1db   : > { %v752_v5 = vmul.f32 %v2417_v36, %v736_v29  ;;  %v2420_v36 = vld [vmem:[%s2690_s25 + $0x58] sm:$0xff] }
 0x1dc   : > { %1799 = vperm.xlu0 %2388, %v1761_v6   ;;  %v1185_v24 = vadd.f32 %v1184_v42, %v1183_v25  ;;  %v1722_v27 = vadd.f32 %v1721_v41, %v1720_v44  ;;  %v2419_v6 = vld [vmem:[%s2690_s25 + $0x50] sm:$0xff] }
 0x1dd   : > { %v1657_v9 = vpop.xlane.xlu1 %1656  ;;  %v1315_v46 = vmul.f32 %v3128_v18, %v752_v5 }
 0x1de   : > { %v1186_v31 = vrot.slane %v1185_v24, 1  ;;  %v1762_v60 = vmul.f32 %v1657_v9, %v750_v43 }
 0x1e0   : > { %1355 = vperm.xlu0 %2388, %v1313_v16   ;;  %v1187_v10 = vadd.f32 %v1186_v31, %v1185_v24  ;;  %v1314_v31 = vmul.f32 %v3126_v40, %v751_v57  ;;  %v738_v24 = vmul.f32 %v2419_v6, %v2419_v6 }
 0x1e1   : > { %v1659_v61 = vpop.xlane.xlu1 %1658 }
 0x1e2   : > { %2329 = vpush %v1187_v10  ;;  %v3175_v10 = vrot.slane %v727_v58, %v2762_v37  ;;  %v1763_v14 = vmul.f32 %v1659_v61, %v751_v57 }
 0x1e3   : > { %2331 = vpush %v1722_v27 }
 0x1e4   : > { %1804 = vperm.xlu0 %2388, %v1762_v60   ;;  %v1195_v37 = vmul.f32 %v3175_v10, %v2789_v63 }
 0x1e5   : > { %v1661_v4 = vpop.xlane.xlu1 %1660  ;;  %v1780_v22 = vpop.permute.xlu0 %1779  ;;  %542 = vadd.xlane.f32.xlu1 %v541_v11  ;;  %v3201_v11 = vmul.f32 %v2419_v6, %v738_v24  ;;  %v3229_v6 = vstv %s3218_s18 }
 0x1e6   : > { %v1853_v41 = vmul.f32 %v1780_v22, %v3167_v15  ;;  %v1764_v44 = vmul.f32 %v1661_v4, %v752_v5 }
 0x1e8   : > { %v3177_v9 = vadd.f32 %v1876_v51, %v1853_v41  ;;  %1360 = vperm.xlu0 %2388, %v1314_v31   ;;  %v2418_v51 = vld [vmem:[%s2690_s25 + $0x48] sm:$0xff]  ;;  %v739_v31 = vmul.f32 %v2420_v36, %v2420_v36  ;;  %v1317_v41 = vmul.f32 %v3133_v35, %v3201_v11 }
 0x1e9   : > { %v1663_v60 = vpop.xlane.xlu1 %1662  ;;  %v3179_v16 = vpop.permute.xlu0 %1438  ;;  %v737_v28 = vmul.f32 %v2418_v51, %v2418_v51 }
 0x1ea   : > { %v3183_v47 = vmul.f32 %v3156_v53, %v3179_v16  ;;  %v3187_v40 = vmul.f32 %v3153_v21, %v3179_v16 }
 0x1eb   : > { %v753_v23 = vmul.f32 %v2418_v51, %v737_v28 }
 0x1ec   : > { %1809 = vperm.xlu0 %2388, %v1763_v14   ;;  %v2421_v14 = vld [vmem:[%s2690_s25 + $0x60] sm:$0xff] }
 0x1ed   : > { %v1665_v49 = vpop.xlane.xlu1 %1664  ;;  %v1214_v58 = vpop.permute.xlu0 %1213  ;;  %v1316_v63 = vmul.f32 %v3131_v62, %v753_v23  ;;  %v1765_v18 = vmul.f32 %v1663_v60, %v753_v23 }
 0x1ee   : > { %v3193_v61 = vmul.f32 %v1214_v58, %v1195_v37  ;;  %v1766_v60 = vmul.f32 %v1665_v49, %v3201_v11  ;;  %v3216_v37 = vmul.f32 %v2421_v14, %v2421_v14 }
 0x1f0   : > { %1365 = vperm.xlu0 %2388, %v1315_v46  }
 0x1f1   : > { %v1667_v25 = vpop.xlane.xlu1 %1666 }
 0x1f4   : > { %1814 = vperm.xlu0 %2388, %v1764_v44   ;;  %v3203_v22 = vpop.permute.xlu0 %1789  ;;  %v3226_v44 = vmul.f32 %v2421_v14, %v3216_v37 }
 0x1f5   : > { %v3195_v42 = vpop.xlane.xlu1 %1668 }
 0x1f6   : > { %1243 = vperm.xlu1 %2389, %v750_v43   ;;  %v3212_v43 = vmul.f32 %v2420_v36, %v739_v31 }
 0x1f8   : > { %1370 = vperm.xlu0 %2388, %v1316_v63   ;;  %v1318_v35 = vmul.f32 %v3135_v17, %v3212_v43  ;;  %v1767_v17 = vmul.f32 %v1667_v25, %v3212_v43  ;;  %v1319_v25 = vmul.f32 %v3137_v20, %v3226_v44 }
 0x1f9   : > { %v3199_v27 = vpop.xlane.xlu1 %1670 }
 0x1fa   : > { %1468 = vperm.xlu1 %2389, %v736_v29   ;;  %v1326_v29 = vpop.permute.xlu0 %1325 }
 0x1fc   : > { %1819 = vperm.xlu0 %2388, %v1765_v18   ;;  %v1724_v18 = vmul.f32 %v3175_v10, %v2795_v3  ;;  %v1725_v3 = vmul.f32 %v3175_v10, %v2798_v7 }
 0x1fd   : > { %v3205_v4 = vpop.xlane.xlu1 %1672 }
 0x1fe   : > { %1248 = vperm.xlu1 %2389, %v751_v57   ;;  %v1409_v57 = vmul.f32 %v3167_v15, %v1326_v29  ;;  %v2422_v29 = vld [vmem:[%s2690_s25 + $0x68] sm:$0xff] }
 0x1ff   : > { %v3241_v14 = vmul.f32 %v2422_v29, %v2422_v29 }
 0x200   : > { %1375 = vperm.xlu0 %2388, %v1317_v41  }
 0x201   : > { %v3210_v62 = vpop.xlane.xlu1 %1674  ;;  %v3253_v7 = vmul.f32 %v2422_v29, %v3241_v14 }
 0x202   : > { %1473 = vperm.xlu1 %2389, %v737_v28  }
 0x204   : > { %1824 = vperm.xlu0 %2388, %v1766_v60  }
 0x205   : > { %v1429_v51 = vpop.permute.xlu1 %1428 }
 0x206   : > { %v1512_v46 = vmul.f32 %v3156_v53, %v1429_v51  ;;  %v1875_v49 = vmul.f32 %v3153_v21, %v1429_v51  ;;  %1253 = vperm.xlu1 %2389, %v752_v5  }
 0x208   : > { %v1528_v28 = vadd.f32 %v1512_v46, %v1409_v57  ;;  %1380 = vperm.xlu0 %2388, %v1318_v35   ;;  %v1740_v57 = vmul.f32 %v1724_v18, %v1214_v58  ;;  %v1908_v58 = vmul.f32 %v3177_v9, %v3229_v6  ;;  %v1320_v9 = vmul.f32 %v3140_v33, %v3253_v7 }
 0x209   : > { %v1775_v63 = vpop.permute.xlu1 %1774 }
 0x20a   : > { %v3235_v36 = vmul.f32 %v3229_v6, %v1528_v28  ;;  %v1852_v41 = vmul.f32 %v1775_v63, %v3167_v15  ;;  %1478 = vperm.xlu1 %2389, %v738_v24   ;;  %v1196_v63 = vmul.f32 %v3175_v10, %v2791_v1 }
 0x20c   : > { %v1561_v5 = vsub.f32 %v3193_v61, %v3235_v36  ;;  %v1891_v60 = vadd.f32 %v1875_v49, %v1852_v41  ;;  %1829 = vperm.xlu0 %2388, %v1767_v17   ;;  %v1341_v61 = vpop.permute.xlu0 %1340 }
 0x20d   : > { %v1785_v35 = vpop.permute.xlu1 %1784  ;;  %v1412_v29 = vmul.f32 %v3167_v15, %v1341_v61 }
 0x20e   : > { %v1907_v46 = vmul.f32 %v1891_v60, %v3229_v6  ;;  %v1854_v24 = vmul.f32 %v1785_v35, %v3167_v15  ;;  %1258 = vperm.xlu1 %2389, %v753_v23   ;;  %v1768_v23 = vmul.f32 %v3195_v42, %v3226_v44  ;;  %v3596_v42 = vld [vmem:[#allocation5_spill] sm:$0xff] }
 0x20f   : > { %v1726_v60 = vmul.f32 %v3175_v10, %v3596_v42 }
 0x210   : > { %v1923_v49 = vsub.f32 %v1740_v57, %v1907_v46  ;;  %v1893_v28 = vadd.f32 %v3187_v40, %v1854_v24  ;;  %1385 = vperm.xlu0 %2388, %v1319_v25   ;;  %v2423_v40 = vld [vmem:[%s2690_s25 + $0x70] sm:$0xff]  ;;  %v1346_v35 = vpop.permute.xlu0 %1345  ;;  %v1579_v57 = vmul.f32 %v1429_v51, %v3167_v15  ;;  %v3597_v46 = vld [vmem:[#allocation6_spill] sm:$0xff]  ;;  %v1580_v24 = vmul.f32 %v3158_v2, %v3167_v15 }
 0x211   : > { %v1219_v20 = vpop.permute.xlu1 %1218  ;;  %v3262_v36 = vmul.f32 %v2423_v40, %v2423_v40  ;;  %v1769_v51 = vmul.f32 %v3199_v27, %v3253_v7 }
 0x212   : > { %v3259_v18 = vmul.f32 %v1219_v20, %v1196_v63  ;;  %v1741_v17 = vmul.f32 %v1725_v3, %v1219_v20  ;;  %1483 = vperm.xlu1 %2389, %v739_v31   ;;  %v1855_v31 = vmul.f32 %v3203_v22, %v3167_v15  ;;  %v1197_v22 = vmul.f32 %v3175_v10, %v3597_v46  ;;  %v2424_v46 = vld [vmem:[%s2690_s25 + $0x78] sm:$0xff] }
 0x213   : > { %s2330_s28 = spop %2329  ;;  %v3282_v33 = vmul.f32 %v2423_v40, %v3262_v36  ;;  %v1909_v2 = vmul.f32 %v1893_v28, %v3229_v6  ;;  %v3312_v52 = vmul.f32 %v2424_v46, %v2424_v46 }
 0x214   : > { %v1924_v1 = vsub.f32 %v1741_v17, %v1908_v58  ;;  %s1577_s19 = smul.f32 %s2330_s28, %s3218_s18  ;;  %s2332_s22 = spop %2331  ;;  %1834 = vperm.xlu0 %2388, %v1768_v23  }
 0x215   : > { %s1939_s23 = smul.f32 %s2332_s22, %s3218_s18  ;;  %v3268_v41 = vpop.permute.xlu1 %1443  ;;  %v1321_v28 = vmul.f32 %v3144_v13, %v3282_v33 }
 0x216   : > { %s1578_s29 = smul.f32 %s3218_s18, %s1577_s19  ;;  %v1515_v3 = vmul.f32 %v3156_v53, %v3268_v41  ;;  %v1878_v25 = vmul.f32 %v3153_v21, %v3268_v41  ;;  %1263 = vperm.xlu1 %2389, %v3201_v11   ;;  %v3296_v11 = vmul.f32 %v3179_v16, %v3167_v15 }
 0x217   : > { %s1940_s15 = smul.f32 %s3218_s18, %s1939_s23 }
 0x218   : > { %v3290_v61 = vstv %s1578_s29  ;;  %v1531_v63 = vadd.f32 %v1515_v3, %v1412_v29  ;;  %v3292_v20 = vadd.f32 %v1878_v25, %v1855_v31  ;;  %1390 = vperm.xlu0 %2388, %v1320_v9   ;;  %v1795_v29 = vpop.permute.xlu0 %1794 }
 0x219   : > { %v3300_v58 = vstv %s1940_s15  ;;  %v1224_v23 = vpop.permute.xlu1 %1223  ;;  %v1596_v17 = vmul.f32 %v3290_v61, %v1579_v57 }
 0x21a   : > { %v1942_v40 = vmul.f32 %v3300_v58, %v1579_v57  ;;  %v3305_v42 = vmul.f32 %v1224_v23, %v1197_v22  ;;  %v1742_v9 = vmul.f32 %v1726_v60, %v1224_v23  ;;  %1488 = vperm.xlu1 %2389, %v3216_v37   ;;  %v1943_v16 = vmul.f32 %v3300_v58, %v1580_v24 }
 0x21b   : > { %v1612_v31 = vadd.f32 %v1596_v17, %v1561_v5  ;;  %v1944_v3 = vmul.f32 %v3300_v58, %v3296_v11  ;;  %v1413_v37 = vmul.f32 %v3167_v15, %v1346_v35 }
 0x21c   : > { %v1925_v27 = vsub.f32 %v1742_v9, %v1909_v2  ;;  %v1958_v25 = vadd.f32 %v1942_v40, %v1923_v49  ;;  %1839 = vperm.xlu0 %2388, %v1769_v51   ;;  %v1959_v57 = vadd.f32 %v1943_v16, %v1924_v1  ;;  %v1856_v49 = vmul.f32 %v1795_v29, %v3167_v15 }
 0x21d   : > { %v3316_v60 = vpop.permute.xlu1 %1448  ;;  %v759_v16 = vmul.f32 %v2424_v46, %v3312_v52  ;;  %v1582_v46 = vmul.f32 %v3268_v41, %v3167_v15 }
 0x21e   : > { %v3319_v22 = vadd.f32 %v1944_v3, %v1925_v27  ;;  %v2015_v5 = vmul.f32 %v1958_v25, %v1958_v25  ;;  %v1516_v23 = vmul.f32 %v3156_v53, %v3316_v60  ;;  %1268 = vperm.xlu1 %2389, %v3212_v43   ;;  %v2016_v51 = vmul.f32 %v1959_v57, %v1959_v57 }
 0x21f   : > { %v1879_v17 = vmul.f32 %v3153_v21, %v3316_v60  ;;  %v1974_v13 = vmul.f32 %v1958_v25, %v1612_v31  ;;  %v1770_v43 = vmul.f32 %v3205_v4, %v3282_v33  ;;  %v1727_v4 = vmul.f32 %v3175_v10, %v2837_v12 }
 0x220   : > { %v2017_v1 = vmul.f32 %v3319_v22, %v3319_v22  ;;  %v3329_v2 = vadd.f32 %v1516_v23, %v1413_v37  ;;  %1395 = vperm.xlu0 %2388, %v1321_v28   ;;  %v2031_v35 = vadd.f32 %v2016_v51, %v2015_v5  ;;  %v1322_v28 = vmul.f32 %v3150_v59, %v759_v16 }
 0x221   : > { %v3331_v40 = vadd.f32 %v1879_v17, %v1856_v49  ;;  %v1331_v9 = vpop.permute.xlu1 %1330  ;;  %v1198_v59 = vmul.f32 %v3175_v10, %v2831_v54  ;;  %v1771_v49 = vmul.f32 %v3210_v62, %v759_v16  ;;  %v1910_v54 = vmul.f32 %v3292_v20, %v3229_v6  ;;  %v1351_v62 = vpop.permute.xlu0 %1350 }
 0x222   : > { %v1410_v29 = vmul.f32 %v3167_v15, %v1331_v9  ;;  %1493 = vperm.xlu1 %2389, %v3241_v14   ;;  %v2032_v27 = vadd.f32 %v2031_v35, %v2017_v1  ;;  %v1414_v20 = vmul.f32 %v3167_v15, %v1351_v62  ;;  %v3598_v62 = vld [vmem:[#allocation7_spill] sm:$0xff] }
 0x224   : > { %v1529_v3 = vadd.f32 %v3162_v38, %v1410_v29  ;;  %1844 = vperm.xlu0 %2388, %v1770_v43   ;;  %v1597_v38 = vmul.f32 %v3290_v61, %v1580_v24  ;;  %v2064_v24 = vmul.f32 %v1612_v31, %v1612_v31  ;;  %v1945_v29 = vmul.f32 %v3300_v58, %v1582_v46 }
 0x225   : > { %v1336_v25 = vpop.permute.xlu1 %1335  ;;  %v1728_v31 = vmul.f32 %v3175_v10, %v2820_v39  ;;  %v1199_v39 = vmul.f32 %v3175_v10, %v2847_v8 }
 0x226   : > { %v1546_v37 = vmul.f32 %v3229_v6, %v1529_v3  ;;  %v1411_v5 = vmul.f32 %v3167_v15, %v1336_v25  ;;  %1273 = vperm.xlu1 %2389, %v3226_v44   ;;  %v1548_v44 = vmul.f32 %v3229_v6, %v1531_v63 }
 0x228   : > { %v1562_v14 = vsub.f32 %v3259_v18, %v1546_v37  ;;  %v1530_v23 = vadd.f32 %v3183_v47, %v1411_v5  ;;  %1400 = vperm.xlu0 %2388, %v1322_v28   ;;  %v1599_v18 = vmul.f32 %v3290_v61, %v1582_v46  ;;  %v1598_v47 = vmul.f32 %v3290_v61, %v3296_v11 }
 0x229   : > { %v1229_v51 = vpop.permute.xlu1 %1228 }
 0x22a   : > { %v1613_v17 = vadd.f32 %v1597_v38, %v1562_v14  ;;  %v1547_v12 = vmul.f32 %v3229_v6, %v1530_v23  ;;  %v1294_v1 = vmul.f32 %v1229_v51, %v1198_v59  ;;  %v1743_v41 = vmul.f32 %v1727_v4, %v1229_v51  ;;  %1498 = vperm.xlu1 %2389, %v3262_v36  }
 0x22b   : > { %v1583_v4 = vmul.f32 %v3316_v60, %v3167_v15  ;;  %v1549_v59 = vmul.f32 %v3229_v6, %v3329_v2 }
 0x22c   : > { %v1975_v35 = vmul.f32 %v1959_v57, %v1613_v17  ;;  %v2065_v9 = vmul.f32 %v1613_v17, %v1613_v17  ;;  %v1563_v63 = vsub.f32 %v3305_v42, %v1547_v12  ;;  %v1564_v43 = vsub.f32 %v1294_v1, %v1548_v44  ;;  %1849 = vperm.xlu0 %2388, %v1771_v49  }
 0x22d   : > { %v1926_v3 = vsub.f32 %v1743_v41, %v1910_v54  ;;  %v1454_v36 = vpop.permute.xlu1 %1453  ;;  %v1600_v8 = vmul.f32 %v3290_v61, %v1583_v4 }
 0x22e   : > { %v1990_v25 = vadd.f32 %v1975_v35, %v1974_v13  ;;  %v2080_v28 = vadd.f32 %v2065_v9, %v2064_v24  ;;  %v1614_v11 = vadd.f32 %v1598_v47, %v1563_v63  ;;  %v1615_v37 = vadd.f32 %v1599_v18, %v1564_v43  ;;  %1278 = vperm.xlu1 %2389, %v3253_v7  }
 0x22f   : > { %v1961_v57 = vadd.f32 %v1945_v29, %v1926_v3  ;;  %v1517_v42 = vmul.f32 %v3156_v53, %v1454_v36  ;;  %v1880_v5 = vmul.f32 %v3153_v21, %v1454_v36  ;;  %v1946_v18 = vmul.f32 %v3300_v58, %v1583_v4 }
 0x230   : > { %v1976_v46 = vmul.f32 %v3319_v22, %v1614_v11  ;;  %v2066_v14 = vmul.f32 %v1614_v11, %v1614_v11  ;;  %1288 = vperm.xlu0 %2388, %v759_v16   ;;  %v2067_v51 = vmul.f32 %v1615_v37, %v1615_v37  ;;  %v1911_v16 = vmul.f32 %v3331_v40, %v3229_v6 }
 0x231   : > { %v1977_v13 = vmul.f32 %v1961_v57, %v1615_v37  ;;  %v2018_v38 = vmul.f32 %v1961_v57, %v1961_v57  ;;  %v1533_v7 = vadd.f32 %v1517_v42, %v1414_v20  ;;  %v1234_v23 = vpop.permute.xlu1 %1233  ;;  %v1200_v35 = vmul.f32 %v3175_v10, %v3598_v62 }
 0x232   : > { %v1991_v49 = vadd.f32 %v1990_v25, %v1976_v46  ;;  %v2081_v44 = vadd.f32 %v2080_v28, %v2066_v14  ;;  %v1295_v17 = vmul.f32 %v1234_v23, %v1199_v39  ;;  %1503 = vperm.xlu1 %2389, %v3312_v52   ;;  %v1744_v22 = vmul.f32 %v1728_v31, %v1234_v23 }
 0x233   : > { %v2033_v60 = vadd.f32 %v2032_v27, %v2018_v38  ;;  %v1584_v52 = vmul.f32 %v1454_v36, %v3167_v15  ;;  %v1550_v3 = vmul.f32 %v3229_v6, %v1533_v7  ;;  %v1729_v57 = vmul.f32 %v3175_v10, %v2951_v30 }
 0x234   : > { %v1992_v12 = vadd.f32 %v1991_v49, %v1977_v13  ;;  %v2082_v1 = vadd.f32 %v2081_v44, %v2067_v51  ;;  %v1565_v41 = vsub.f32 %v1295_v17, %v1549_v59  ;;  %v1927_v24 = vsub.f32 %v1744_v22, %v1911_v16 }
 0x235   : > { %v1459_v2 = vpop.permute.xlu1 %1458  ;;  %v1601_v28 = vmul.f32 %v3290_v61, %v1584_v52  ;;  %v1947_v13 = vmul.f32 %v3300_v58, %v1584_v52 }
 0x236   : > { %v1616_v47 = vadd.f32 %v1600_v8, %v1565_v41  ;;  %1283 = vperm.xlu1 %2389, %v3282_v33   ;;  %v1962_v54 = vadd.f32 %v1946_v18, %v1927_v24  ;;  %v1518_v8 = vmul.f32 %v3156_v53, %v1459_v2  ;;  %v1585_v52 = vmul.f32 %v1459_v2, %v3167_v15 }
 0x238   : > { %v2068_v27 = vmul.f32 %v1616_v47, %v1616_v47  ;;  %v1978_v40 = vmul.f32 %v1962_v54, %v1616_v47  ;;  %v2019_v9 = vmul.f32 %v1962_v54, %v1962_v54  ;;  %v1730_v54 = vmul.f32 %v3175_v10, %v2953_v34 }
 0x239   : > { %v1239_v63 = vpop.permute.xlu1 %1238 }
 0x23a   : > { %v2083_v43 = vadd.f32 %v2082_v1, %v2068_v27  ;;  %v1296_v29 = vmul.f32 %v1239_v63, %v1200_v35  ;;  %v1993_v31 = vadd.f32 %v1992_v12, %v1978_v40  ;;  %v2034_v25 = vadd.f32 %v2033_v60, %v2019_v9  ;;  %v3599_v27 = vld [vmem:[#allocation8_spill] sm:$0xff] }
 0x23b   : > { %v1745_v14 = vmul.f32 %v1729_v57, %v1239_v63  ;;  %v1881_v12 = vmul.f32 %v3153_v21, %v1459_v2  ;;  %v1201_v62 = vmul.f32 %v3175_v10, %v3599_v27  ;;  %v1602_v2 = vmul.f32 %v3290_v61, %v1585_v52 }
 0x23c   : > { %v1566_v11 = vsub.f32 %v1296_v29, %v1550_v3 }
 0x23d   : > { %v1464_v30 = vpop.permute.xlu1 %1463 }
 0x23e   : > { %v1617_v33 = vadd.f32 %v1601_v28, %v1566_v11  ;;  %v1519_v3 = vmul.f32 %v3156_v53, %v1464_v30  ;;  %v1882_v11 = vmul.f32 %v3153_v21, %v1464_v30 }
 0x240   : > { %v2069_v37 = vmul.f32 %v1617_v33, %v1617_v33 }
 0x242   : > { %v3387_v20 = vadd.f32 %v2083_v43, %v2069_v37 }
 0x257   : > { %v1800_v36 = vpop.permute.xlu0 %1799 }
 0x258   : > { %v1857_v42 = vmul.f32 %v1800_v36, %v3167_v15 }
 0x25a   : > { %v1896_v4 = vadd.f32 %v1880_v5, %v1857_v42 }
 0x25b   : > { %v1356_v46 = vpop.permute.xlu0 %1355 }
 0x25c   : > { %v1912_v39 = vmul.f32 %v1896_v4, %v3229_v6  ;;  %v1415_v22 = vmul.f32 %v3167_v15, %v1356_v46  ;;  %v3600_v46 = vld [vmem:[#allocation9_spill] sm:$0xff] }
 0x25e   : > { %v1928_v38 = vsub.f32 %v1745_v14, %v1912_v39  ;;  %v1534_v41 = vadd.f32 %v1518_v8, %v1415_v22  ;;  %v1202_v14 = vmul.f32 %v3175_v10, %v3600_v46  ;;  %v1731_v39 = vmul.f32 %v3175_v10, %v2966_v48 }
 0x25f   : > { %v1805_v7 = vpop.permute.xlu0 %1804 }
 0x260   : > { %v1963_v23 = vadd.f32 %v1947_v13, %v1928_v38  ;;  %v1858_v5 = vmul.f32 %v1805_v7, %v3167_v15  ;;  %v1551_v9 = vmul.f32 %v3229_v6, %v1534_v41  ;;  %v1586_v13 = vmul.f32 %v1464_v30, %v3167_v15 }
 0x262   : > { %v1979_v59 = vmul.f32 %v1963_v23, %v1617_v33  ;;  %v2020_v49 = vmul.f32 %v1963_v23, %v1963_v23  ;;  %v1897_v18 = vadd.f32 %v1881_v12, %v1858_v5 }
 0x263   : > { %v1361_v51 = vpop.permute.xlu0 %1360 }
 0x264   : > { %v1994_v44 = vadd.f32 %v1993_v31, %v1979_v59  ;;  %v2035_v17 = vadd.f32 %v2034_v25, %v2020_v49  ;;  %v1416_v35 = vmul.f32 %v3167_v15, %v1361_v51  ;;  %v1913_v63 = vmul.f32 %v1897_v18, %v3229_v6 }
 0x265   : > { %v1948_v31 = vmul.f32 %v3300_v58, %v1585_v52  ;;  %v1603_v18 = vmul.f32 %v3290_v61, %v1586_v13  ;;  %v1949_v52 = vmul.f32 %v3300_v58, %v1586_v13 }
 0x266   : > { %v1535_v33 = vadd.f32 %v1519_v3, %v1416_v35 }
 0x267   : > { %v1810_v60 = vpop.permute.xlu0 %1809 }
 0x268   : > { %v1859_v34 = vmul.f32 %v1810_v60, %v3167_v15  ;;  %v1552_v59 = vmul.f32 %v3229_v6, %v1535_v33 }
 0x26a   : > { %v1898_v4 = vadd.f32 %v1882_v11, %v1859_v34 }
 0x26b   : > { %v1366_v16 = vpop.permute.xlu0 %1365 }
 0x26c   : > { %v1914_v48 = vmul.f32 %v1898_v4, %v3229_v6  ;;  %v1417_v30 = vmul.f32 %v3167_v15, %v1366_v16 }
 0x26e   : > { %v543_v1 = vpop.xlane.xlu1 %542 }
 0x26f   : > { %v544_v24 = vmul.f32 %v543_v1, %v3066_v45  ;;  %v1815_v47 = vpop.permute.xlu0 %1814 }
 0x271   : > { %546 = vst.msk [vmem:[%s481_s16] sm:$0x7] %vm545_vm2, %v544_v24  ;;  %v1860_v24 = vmul.f32 %v1815_v47, %v3167_v15  ;;  %s484_s16 = scalar_lea.vmem %s3562_s9, %s3615_s13 }
 0x272   : > { %v1244_v40 = vpop.permute.xlu1 %1243 }
 0x273   : > { %v1297_v43 = vmul.f32 %v1244_v40, %v1201_v62  ;;  %v1746_v29 = vmul.f32 %v1730_v54, %v1244_v40  ;;  %v1371_v45 = vpop.permute.xlu0 %1370  ;;  %v1732_v40 = vmul.f32 %v3175_v10, %v2977_v19 }
 0x275   : > { %v1567_v25 = vsub.f32 %v1297_v43, %v1551_v9  ;;  %v1929_v28 = vsub.f32 %v1746_v29, %v1913_v63  ;;  %v3601_v43 = vld [vmem:[#allocation10_spill] sm:$0xff] }
 0x276   : > { %v1469_v37 = vpop.permute.xlu1 %1468  ;;  %v1203_v29 = vmul.f32 %v3175_v10, %v3601_v43 }
 0x277   : > { %v1618_v36 = vadd.f32 %v1602_v2, %v1567_v25  ;;  %v1964_v57 = vadd.f32 %v1948_v31, %v1929_v28  ;;  %v1820_v42 = vpop.permute.xlu0 %1819  ;;  %v1520_v49 = vmul.f32 %v3156_v53, %v1469_v37  ;;  %v1883_v51 = vmul.f32 %v3153_v21, %v1469_v37 }
 0x278   : > { %v1587_v16 = vmul.f32 %v1469_v37, %v3167_v15 }
 0x279   : > { %v1980_v38 = vmul.f32 %v1964_v57, %v1618_v36  ;;  %v2021_v7 = vmul.f32 %v1964_v57, %v1964_v57  ;;  %v2070_v23 = vmul.f32 %v1618_v36, %v1618_v36  ;;  %v1536_v27 = vadd.f32 %v1520_v49, %v1417_v30 }
 0x27a   : > { %v1249_v60 = vpop.permute.xlu1 %1248  ;;  %v1418_v36 = vmul.f32 %v3167_v15, %v1371_v45  ;;  %v1604_v46 = vmul.f32 %v3290_v61, %v1587_v16  ;;  %v1204_v45 = vmul.f32 %v3175_v10, %v2918_v56 }
 0x27b   : > { %v1995_v22 = vadd.f32 %v1994_v44, %v1980_v38  ;;  %v2036_v5 = vadd.f32 %v2035_v17, %v2021_v7  ;;  %v2085_v8 = vadd.f32 %v3387_v20, %v2070_v23  ;;  %v1298_v12 = vmul.f32 %v1249_v60, %v1202_v14  ;;  %v1376_v1 = vpop.permute.xlu0 %1375 }
 0x27c   : > { %v1747_v41 = vmul.f32 %v1731_v39, %v1249_v60  ;;  %v1899_v17 = vadd.f32 %v1883_v51, %v1860_v24  ;;  %v1553_v2 = vmul.f32 %v3229_v6, %v1536_v27  ;;  %v1950_v14 = vmul.f32 %v3300_v58, %v1587_v16 }
 0x27d   : > { %v1568_v54 = vsub.f32 %v1298_v12, %v1552_v59  ;;  %v1861_v38 = vmul.f32 %v1820_v42, %v3167_v15 }
 0x27e   : > { %v1930_v62 = vsub.f32 %v1747_v41, %v1914_v48  ;;  %v1474_v44 = vpop.permute.xlu1 %1473  ;;  %v1915_v28 = vmul.f32 %v1899_v17, %v3229_v6 }
 0x27f   : > { %v1619_v35 = vadd.f32 %v1603_v18, %v1568_v54  ;;  %v1825_v20 = vpop.permute.xlu0 %1824  ;;  %v1521_v34 = vmul.f32 %v3156_v53, %v1474_v44  ;;  %v1884_v4 = vmul.f32 %v3153_v21, %v1474_v44 }
 0x280   : > { %v1965_v9 = vadd.f32 %v1949_v52, %v1930_v62  ;;  %v1419_v62 = vmul.f32 %v3167_v15, %v1376_v1 }
 0x281   : > { %v2071_v63 = vmul.f32 %v1619_v35, %v1619_v35  ;;  %v1537_v7 = vadd.f32 %v1521_v34, %v1418_v36  ;;  %v1900_v60 = vadd.f32 %v1884_v4, %v1861_v38  ;;  %v1734_v34 = vmul.f32 %v3175_v10, %v3009_v50 }
 0x282   : > { %v1981_v47 = vmul.f32 %v1965_v9, %v1619_v35  ;;  %v2022_v3 = vmul.f32 %v1965_v9, %v1965_v9  ;;  %v1254_v31 = vpop.permute.xlu1 %1253  ;;  %v1862_v35 = vmul.f32 %v1825_v20, %v3167_v15 }
 0x283   : > { %v2086_v25 = vadd.f32 %v2085_v8, %v2071_v63  ;;  %v1299_v11 = vmul.f32 %v1254_v31, %v1203_v29  ;;  %v1748_v33 = vmul.f32 %v1732_v40, %v1254_v31  ;;  %v1381_v19 = vpop.permute.xlu0 %1380  ;;  %v1554_v41 = vmul.f32 %v3229_v6, %v1537_v7 }
 0x284   : > { %v1996_v37 = vadd.f32 %v1995_v22, %v1981_v47  ;;  %v2037_v57 = vadd.f32 %v2036_v5, %v2022_v3  ;;  %v1733_v22 = vmul.f32 %v3175_v10, %v3007_v32  ;;  %v1588_v5 = vmul.f32 %v1474_v44, %v3167_v15 }
 0x285   : > { %v1569_v39 = vsub.f32 %v1299_v11, %v1553_v2  ;;  %v1931_v13 = vsub.f32 %v1748_v33, %v1915_v28  ;;  %v1916_v32 = vmul.f32 %v1900_v60, %v3229_v6 }
 0x286   : > { %v1479_v23 = vpop.permute.xlu1 %1478  ;;  %v1605_v17 = vmul.f32 %v3290_v61, %v1588_v5  ;;  %v1951_v9 = vmul.f32 %v3300_v58, %v1588_v5 }
 0x287   : > { %v1620_v59 = vadd.f32 %v1604_v46, %v1569_v39  ;;  %v1966_v49 = vadd.f32 %v1950_v14, %v1931_v13  ;;  %v1830_v51 = vpop.permute.xlu0 %1829  ;;  %v1522_v30 = vmul.f32 %v3156_v53, %v1479_v23  ;;  %v1885_v42 = vmul.f32 %v3153_v21, %v1479_v23 }
 0x288   : > { %v1589_v2 = vmul.f32 %v1479_v23, %v3167_v15  ;;  %v1420_v14 = vmul.f32 %v3167_v15, %v1381_v19  ;;  %v1206_v19 = vmul.f32 %v3175_v10, %v2974_v0 }
 0x289   : > { %v1982_v8 = vmul.f32 %v1966_v49, %v1620_v59  ;;  %v2023_v12 = vmul.f32 %v1966_v49, %v1966_v49  ;;  %v2072_v48 = vmul.f32 %v1620_v59, %v1620_v59  ;;  %v1538_v16 = vadd.f32 %v1522_v30, %v1419_v62 }
 0x28a   : > { %v1259_v18 = vpop.permute.xlu1 %1258  ;;  %v1901_v29 = vadd.f32 %v1885_v42, %v1862_v35  ;;  %v1952_v7 = vmul.f32 %v3300_v58, %v1589_v2  ;;  %v1863_v49 = vmul.f32 %v1830_v51, %v3167_v15 }
 0x28b   : > { %v1997_v24 = vadd.f32 %v1996_v37, %v1982_v8  ;;  %v2038_v54 = vadd.f32 %v2037_v57, %v2023_v12  ;;  %v2087_v52 = vadd.f32 %v2086_v25, %v2072_v48  ;;  %v1300_v27 = vmul.f32 %v1259_v18, %v1204_v45  ;;  %v1386_v56 = vpop.permute.xlu0 %1385 }
 0x28c   : > { %v1749_v44 = vmul.f32 %v1733_v22, %v1259_v18  ;;  %v1205_v25 = vmul.f32 %v3175_v10, %v2931_v55  ;;  %v1555_v33 = vmul.f32 %v3229_v6, %v1538_v16  ;;  %v1917_v57 = vmul.f32 %v1901_v29, %v3229_v6 }
 0x28d   : > { %v1570_v40 = vsub.f32 %v1300_v27, %v1554_v41  ;;  %v1606_v55 = vmul.f32 %v3290_v61, %v1589_v2  ;;  %v1735_v48 = vmul.f32 %v3175_v10, %v3026_v26 }
 0x28e   : > { %v1932_v63 = vsub.f32 %v1749_v44, %v1916_v32  ;;  %v1484_v43 = vpop.permute.xlu1 %1483 }
 0x28f   : > { %v1621_v47 = vadd.f32 %v1605_v17, %v1570_v40  ;;  %v1835_v3 = vpop.permute.xlu0 %1834  ;;  %v1523_v11 = vmul.f32 %v3156_v53, %v1484_v43  ;;  %v1886_v38 = vmul.f32 %v3153_v21, %v1484_v43  ;;  %v1590_v30 = vmul.f32 %v1484_v43, %v3167_v15 }
 0x290   : > { %v1967_v1 = vadd.f32 %v1951_v9, %v1932_v63  ;;  %v1421_v17 = vmul.f32 %v3167_v15, %v1386_v56  ;;  %v1864_v9 = vmul.f32 %v1835_v3, %v3167_v15 }
 0x291   : > { %v2073_v31 = vmul.f32 %v1621_v47, %v1621_v47  ;;  %v1539_v60 = vadd.f32 %v1523_v11, %v1420_v14  ;;  %v1902_v12 = vadd.f32 %v1886_v38, %v1863_v49  ;;  %v1607_v40 = vmul.f32 %v3290_v61, %v1590_v30  ;;  %v3603_v11 = vld [vmem:[#allocation11_spill] sm:$0xff] }
 0x292   : > { %v1983_v20 = vmul.f32 %v1967_v1, %v1621_v47  ;;  %v2024_v28 = vmul.f32 %v1967_v1, %v1967_v1  ;;  %v1264_v36 = vpop.permute.xlu1 %1263  ;;  %v1953_v63 = vmul.f32 %v3300_v58, %v1590_v30 }
 0x293   : > { %v2088_v37 = vadd.f32 %v2087_v52, %v2073_v31  ;;  %v1301_v4 = vmul.f32 %v1264_v36, %v1205_v25  ;;  %v1750_v46 = vmul.f32 %v1734_v34, %v1264_v36  ;;  %v1391_v50 = vpop.permute.xlu0 %1390  ;;  %v1918_v26 = vmul.f32 %v1902_v12, %v3229_v6  ;;  %v3602_v31 = vld [vmem:[#allocation13_spill] sm:$0xff] }
 0x294   : > { %v1998_v39 = vadd.f32 %v1997_v24, %v1983_v20  ;;  %v2039_v13 = vadd.f32 %v2038_v54, %v2024_v28  ;;  %v1556_v54 = vmul.f32 %v3229_v6, %v1539_v60  ;;  %v1736_v25 = vmul.f32 %v3175_v10, %v3602_v31 }
 0x295   : > { %v1571_v23 = vsub.f32 %v1301_v4, %v1555_v33  ;;  %v1933_v59 = vsub.f32 %v1750_v46, %v1917_v57  ;;  %v1207_v33 = vmul.f32 %v3175_v10, %v3603_v11 }
 0x296   : > { %v1489_v45 = vpop.permute.xlu1 %1488 }
 0x297   : > { %v1622_v22 = vadd.f32 %v1606_v55, %v1571_v23  ;;  %v1968_v5 = vadd.f32 %v1952_v7, %v1933_v59  ;;  %v1840_v8 = vpop.permute.xlu0 %1839  ;;  %v1524_v24 = vmul.f32 %v3156_v53, %v1489_v45  ;;  %v1887_v51 = vmul.f32 %v3153_v21, %v1489_v45 }
 0x298   : > { %v1591_v20 = vmul.f32 %v1489_v45, %v3167_v15  ;;  %v1422_v55 = vmul.f32 %v3167_v15, %v1391_v50 }
 0x299   : > { %v1984_v42 = vmul.f32 %v1968_v5, %v1622_v22  ;;  %v2025_v41 = vmul.f32 %v1968_v5, %v1968_v5  ;;  %v2074_v18 = vmul.f32 %v1622_v22, %v1622_v22  ;;  %v1540_v43 = vadd.f32 %v1524_v24, %v1421_v17  ;;  %v3609_v17 = vld [vmem:[#allocation16_spill] sm:$0xff] }
 0x29a   : > { %v1269_v52 = vpop.permute.xlu1 %1268  ;;  %v1903_v34 = vadd.f32 %v1887_v51, %v1864_v9  ;;  %v1608_v49 = vmul.f32 %v3290_v61, %v1591_v20  ;;  %v1954_v60 = vmul.f32 %v3300_v58, %v1591_v20  ;;  %v1865_v5 = vmul.f32 %v1840_v8, %v3167_v15  ;;  %v3606_v51 = vld [vmem:[#allocation15_spill] sm:$0xff] }
 0x29b   : > { %v1999_v27 = vadd.f32 %v1998_v39, %v1984_v42  ;;  %v2040_v62 = vadd.f32 %v2039_v13, %v2025_v41  ;;  %v2089_v32 = vadd.f32 %v2088_v37, %v2074_v18  ;;  %v1302_v44 = vmul.f32 %v1269_v52, %v1206_v19  ;;  %v1396_v0 = vpop.permute.xlu0 %1395  ;;  %v3605_v42 = vld [vmem:[#allocation14_spill] sm:$0xff] }
 0x29c   : > { %v1751_v35 = vmul.f32 %v1735_v48, %v1269_v52  ;;  %v1557_v57 = vmul.f32 %v3229_v6, %v1540_v43  ;;  %v1919_v14 = vmul.f32 %v1903_v34, %v3229_v6  ;;  %v3604_v48 = vld [vmem:[#allocation12_spill] sm:$0xff]  ;;  %v1209_v50 = vmul.f32 %v3175_v10, %v3605_v42  ;;  %v3607_v52 = vld [vmem:[#allocation18_spill] sm:$0xff] }
 0x29d   : > { %v1572_v16 = vsub.f32 %v1302_v44, %v1556_v54  ;;  %v1208_v30 = vmul.f32 %v3175_v10, %v3604_v48  ;;  %v1737_v54 = vmul.f32 %v3175_v10, %v3606_v51 }
 0x29e   : > { %v1934_v29 = vsub.f32 %v1751_v35, %v1918_v26  ;;  %v1494_v47 = vpop.permute.xlu1 %1493  ;;  %v1738_v26 = vmul.f32 %v3175_v10, %v3609_v17 }
 0x29f   : > { %v1623_v1 = vadd.f32 %v1607_v40, %v1572_v16  ;;  %v1845_v2 = vpop.permute.xlu0 %1844  ;;  %v1525_v37 = vmul.f32 %v3156_v53, %v1494_v47  ;;  %v1888_v59 = vmul.f32 %v3153_v21, %v1494_v47 }
 0x2a0   : > { %v1969_v56 = vadd.f32 %v1953_v63, %v1934_v29  ;;  %v1423_v63 = vmul.f32 %v3167_v15, %v1396_v0  ;;  %v1866_v20 = vmul.f32 %v1845_v2, %v3167_v15 }
 0x2a1   : > { %v2075_v28 = vmul.f32 %v1623_v1, %v1623_v1  ;;  %v1541_v12 = vadd.f32 %v1525_v37, %v1422_v55  ;;  %v1904_v8 = vadd.f32 %v1888_v59, %v1865_v5 }
 0x2a2   : > { %v1985_v3 = vmul.f32 %v1969_v56, %v1623_v1  ;;  %v2026_v36 = vmul.f32 %v1969_v56, %v1969_v56  ;;  %v1274_v4 = vpop.permute.xlu1 %1273 }
 0x2a3   : > { %v2090_v46 = vadd.f32 %v2089_v32, %v2075_v28  ;;  %v1303_v39 = vmul.f32 %v1274_v4, %v1207_v33  ;;  %v1752_v13 = vmul.f32 %v1736_v25, %v1274_v4  ;;  %v1401_v38 = vpop.permute.xlu0 %1400  ;;  %v3608_v32 = vld [vmem:[#allocation17_spill] sm:$0xff]  ;;  %v1920_v28 = vmul.f32 %v1904_v8, %v3229_v6 }
 0x2a4   : > { %v2000_v7 = vadd.f32 %v1999_v27, %v1985_v3  ;;  %v2041_v23 = vadd.f32 %v2040_v62, %v2026_v36  ;;  %v1210_v27 = vmul.f32 %v3175_v10, %v3607_v52  ;;  %v1592_v62 = vmul.f32 %v1494_v47, %v3167_v15 }
 0x2a5   : > { %v1573_v45 = vsub.f32 %v1303_v39, %v1557_v57  ;;  %v1935_v22 = vsub.f32 %v1752_v13, %v1919_v14  ;;  %v1739_v44 = vmul.f32 %v3175_v10, %v3608_v32  ;;  %v1558_v47 = vmul.f32 %v3229_v6, %v1541_v12 }
 0x2a6   : > { %v1499_v19 = vpop.permute.xlu1 %1498  ;;  %v1609_v10 = vmul.f32 %v3290_v61, %v1592_v62  ;;  %v1955_v0 = vmul.f32 %v3300_v58, %v1592_v62  ;;  %v1424_v33 = vmul.f32 %v3167_v15, %v1401_v38 }
 0x2a7   : > { %v1624_v41 = vadd.f32 %v1608_v49, %v1573_v45  ;;  %v1970_v18 = vadd.f32 %v1954_v60, %v1935_v22  ;;  %v1850_v24 = vpop.permute.xlu0 %1849  ;;  %v1526_v16 = vmul.f32 %v3156_v53, %v1499_v19  ;;  %v1593_v43 = vmul.f32 %v1499_v19, %v3167_v15 }
 0x2a8   : > { %v1889_v29 = vmul.f32 %v3153_v21, %v1499_v19 }
 0x2a9   : > { %v1986_v35 = vmul.f32 %v1970_v18, %v1624_v41  ;;  %v2027_v40 = vmul.f32 %v1970_v18, %v1970_v18  ;;  %v2076_v9 = vmul.f32 %v1624_v41, %v1624_v41  ;;  %v1542_v3 = vadd.f32 %v1526_v16, %v1423_v63 }
 0x2aa   : > { %v1279_v34 = vpop.permute.xlu1 %1278  ;;  %v1610_v57 = vmul.f32 %v3290_v61, %v1593_v43  ;;  %v1905_v4 = vadd.f32 %v1889_v29, %v1866_v20 }
 0x2ab   : > { %v2001_v1 = vadd.f32 %v2000_v7, %v1986_v35  ;;  %v2042_v31 = vadd.f32 %v2041_v23, %v2027_v40  ;;  %v2091_v25 = vadd.f32 %v2090_v46, %v2076_v9  ;;  %v1304_v56 = vmul.f32 %v1279_v34, %v1208_v30  ;;  %v1289_v37 = vpop.permute.xlu0 %1288 }
 0x2ac   : > { %v1753_v11 = vmul.f32 %v1737_v54, %v1279_v34  ;;  %v1867_v46 = vmul.f32 %v1850_v24, %v3167_v15  ;;  %v1956_v23 = vmul.f32 %v3300_v58, %v1593_v43  ;;  %v1306_v59 = vmul.f32 %v1289_v37, %v1210_v27 }
 0x2ad   : > { %v1574_v36 = vsub.f32 %v1304_v56, %v1558_v47  ;;  %v1755_v49 = vmul.f32 %v1739_v44, %v1289_v37  ;;  %v1559_v5 = vmul.f32 %v3229_v6, %v1542_v3 }
 0x2ae   : > { %v1936_v14 = vsub.f32 %v1753_v11, %v1920_v28  ;;  %v1504_v39 = vpop.permute.xlu1 %1503 }
 0x2af   : > { %v1625_v13 = vadd.f32 %v1609_v10, %v1574_v36  ;;  %v1527_v2 = vmul.f32 %v3156_v53, %v1504_v39  ;;  %v1594_v55 = vmul.f32 %v1504_v39, %v3167_v15  ;;  %v1890_v7 = vmul.f32 %v3153_v21, %v1504_v39 }
 0x2b0   : > { %v1971_v38 = vadd.f32 %v1955_v0, %v1936_v14  ;;  %v1921_v53 = vmul.f32 %v1905_v4, %v3229_v6 }
 0x2b1   : > { %v2077_v60 = vmul.f32 %v1625_v13, %v1625_v13  ;;  %v1543_v45 = vadd.f32 %v1527_v2, %v1424_v33  ;;  %v1906_v22 = vadd.f32 %v1890_v7, %v1867_v46  ;;  %v1611_v48 = vmul.f32 %v3290_v61, %v1594_v55 }
 0x2b2   : > { %v1987_v12 = vmul.f32 %v1971_v38, %v1625_v13  ;;  %v2028_v19 = vmul.f32 %v1971_v38, %v1971_v38  ;;  %v1284_v30 = vpop.permute.xlu1 %1283  ;;  %v1957_v18 = vmul.f32 %v3300_v58, %v1594_v55 }
 0x2b3   : > { %v1560_v15 = vmul.f32 %v3229_v6, %v1543_v45  ;;  %v1922_v21 = vmul.f32 %v1906_v22, %v3229_v6  ;;  %v1305_v42 = vmul.f32 %v1284_v30, %v1209_v50  ;;  %v1754_v41 = vmul.f32 %v1738_v26, %v1284_v30 }
 0x2b4   : > { %v2043_v24 = vadd.f32 %v2042_v31, %v2028_v19  ;;  %v2002_v51 = vadd.f32 %v2001_v1, %v1987_v12  ;;  %v2092_v54 = vadd.f32 %v2091_v25, %v2077_v60 }
 0x2b5   : > { %v1576_v52 = vsub.f32 %v1306_v59, %v1560_v15  ;;  %v1938_v27 = vsub.f32 %v1755_v49, %v1922_v21  ;;  %v1575_v62 = vsub.f32 %v1305_v42, %v1559_v5  ;;  %v1937_v8 = vsub.f32 %v1754_v41, %v1921_v53  ;;  %v2425_v15 = vld [vmem:[%s2639_s26] sm:$0x1] }
 0x2b7   : > { %v1627_v32 = vadd.f32 %v1611_v48, %v1576_v52  ;;  %v1973_v61 = vadd.f32 %v1957_v18, %v1938_v27  ;;  %v1626_v44 = vadd.f32 %v1610_v57, %v1575_v62  ;;  %v1972_v17 = vadd.f32 %v1956_v23, %v1937_v8 }
 0x2b9   : > { %v1988_v35 = vmul.f32 %v1972_v17, %v1626_v44  ;;  %v2029_v40 = vmul.f32 %v1972_v17, %v1972_v17  ;;  %v2078_v9 = vmul.f32 %v1626_v44, %v1626_v44  ;;  %v2030_v16 = vmul.f32 %v1973_v61, %v1973_v61 }
 0x2ba   : > { %v1989_v6 = vmul.f32 %v1973_v61, %v1627_v32  ;;  %v2079_v63 = vmul.f32 %v1627_v32, %v1627_v32 }
 0x2bb   : > { %v2044_v50 = vadd.f32 %v2043_v24, %v2029_v40  ;;  %v2003_v26 = vadd.f32 %v2002_v51, %v1988_v35  ;;  %v2093_v58 = vadd.f32 %v2092_v54, %v2078_v9 }
 0x2bd   : > { %v2045_v43 = vadd.f32 %v2044_v50, %v2030_v16  ;;  %v2004_v29 = vadd.f32 %v2003_v26, %v1989_v6  ;;  %v2094_v47 = vadd.f32 %v2093_v58, %v2079_v63 }
 0x2bf   : > { %2046 = vadd.xlane.f32.xlu0 %v2045_v43  ;;  %2005 = vadd.xlane.f32.xlu1 %v2004_v29 }
 0x2c3   : > { %2095 = vadd.xlane.f32.xlu0 %v2094_v47 }
 0x348   : > { %v2047_v34 = vpop.xlane.xlu0 %2046  ;;  %v2006_v1 = vpop.xlane.xlu1 %2005 }
 0x349   : > { %v2048_v31 = vrot.slane %v2047_v34, 4  ;;  %v2007_v25 = vrot.slane %v2006_v1, 4 }
 0x34b   : > { %v2049_v56 = vadd.f32 %v2048_v31, %v2047_v34  ;;  %v2008_v10 = vadd.f32 %v2007_v25, %v2006_v1 }
 0x34c   : > { %v2096_v57 = vpop.xlane.xlu0 %2095 }
 0x34d   : > { %v2050_v20 = vrot.slane %v2049_v56, 2  ;;  %v2009_v28 = vrot.slane %v2008_v10, 2  ;;  %v2097_v4 = vrot.slane %v2096_v57, 4 }
 0x34f   : > { %v2010_v11 = vadd.f32 %v2009_v28, %v2008_v10  ;;  %v2051_v0 = vadd.f32 %v2050_v20, %v2049_v56  ;;  %v2098_v14 = vadd.f32 %v2097_v4, %v2096_v57 }
 0x351   : > { %v2011_v33 = vrot.slane %v2010_v11, 1  ;;  %v2052_v3 = vrot.slane %v2051_v0, 1  ;;  %v2099_v39 = vrot.slane %v2098_v14, 2 }
 0x353   : > { %v2012_v36 = vadd.f32 %v2011_v33, %v2010_v11  ;;  %v2053_v37 = vadd.f32 %v2052_v3, %v2051_v0  ;;  %v2100_v13 = vadd.f32 %v2099_v39, %v2098_v14 }
 0x355   : > { %2333 = vpush %v2012_v36  ;;  %v2101_v55 = vrot.slane %v2100_v13, 1 }
 0x356   : > { %2335 = vpush %v2053_v37 }
 0x357   : > { %v2102_v49 = vadd.f32 %v2101_v55, %v2100_v13 }
 0x386   : > { %s3530_s27 = spop %2333 }
 0x387   : > { %s2336_s20 = spop %2335  ;;  %s2014_s22 = smax.f32 %s2495_s30, %s3530_s27 }
 0x388   : > { %v2055_v46 = vstv %s2336_s20 }
 0x389   : > { %2402 = vrsqrt.f32 %v2055_v46  ;;  %vm2058_vm3 = vcmp.eq.f32.partialorder %v2055_v46, inf  ;;  %v2061_v23 = vand.u32 2147483648, %v2055_v46  ;;  %vm2060_vm4 = vcmp.eq.f32.partialorder %v2055_v46, 0.0 }
 0x396   : > { %v2403_v2 = vpop.eup %2402 }
 0x397   : > { %v2057_v7 = vmul.f32 %v2403_v2, %v2055_v46 }
 0x399   : > { %v2059_v38 = vsel %vm2058_vm3, %v2055_v46, %v2057_v7 }
 0x39a   : > { %v2062_v59 = vsel %vm2060_vm4, %v2061_v23, %v2059_v38 }
 0x39b   : > { %2337 = vpush %v2062_v59 }
 0x39c   : > { %2339 = vpush %v2102_v49 }
 0x3cc   : > { %s2338_s12 = spop %2337 }
 0x3cd   : > { %s2340_s24 = spop %2339 }
 0x3ce   : > { %v2104_v60 = vstv %s2340_s24 }
 0x3cf   : > { %2404 = vrsqrt.f32 %v2104_v60  ;;  %vm2107_vm5 = vcmp.eq.f32.partialorder %v2104_v60, inf  ;;  %v2110_v5 = vand.u32 2147483648, %v2104_v60  ;;  %vm2109_vm6 = vcmp.eq.f32.partialorder %v2104_v60, 0.0 }
 0x3dc   : > { %v2405_v45 = vpop.eup %2404 }
 0x3dd   : > { %v2106_v22 = vmul.f32 %v2405_v45, %v2104_v60 }
 0x3df   : > { %v2108_v12 = vsel %vm2107_vm5, %v2104_v60, %v2106_v22 }
 0x3e0   : > { %v2111_v19 = vsel %vm2109_vm6, %v2110_v5, %v2108_v12 }
 0x3e1   : > { %2341 = vpush %v2111_v19 }
 0x412   : > { %s2342_s18 = spop %2341 }
 0x413   : > { %s2113_s28 = smul.f32 %s2342_s18, %s2338_s12 }
 0x415   : > { %s2114_s19 = smax.f32 %s2495_s30, %s2113_s28 }
 0x416   : > { %v2115_v48 = vstv %s2114_s19 }
 0x417   : > { %2406 = vrcp.f32 %v2115_v48 }
 0x424   : > { %v2407_v53 = vpop.eup %2406 }
 0x425   : > { %2343 = vpush %v2407_v53 }
 0x456   : > { %s2344_s23 = spop %2343 }
 0x457   : > { %s2118_s29 = smul.f32 %s2344_s23, %s2014_s22 }
 0x459   : > { %s2119_s15 = ssub.f32 1.0, %s2118_s29 }
 0x45b   : > { %v2120_v30 = vstv %s2119_s15 }
 0x45c   : > { %v2121_v21 = vmul.f32 %v2425_v15, %v2120_v30 }
 0x45e   : > { %2123 = vst.msk [vmem:[%s484_s16] sm:$0x1] %vm2122_vm7, %v2121_v21 }
 0x45f PF: > { %p20_p8 = scmp.ge.s32.totalorder %s2568_s14, 4   ;;  %s3610_s30 = smov %s2481_s10 }
 0x460   : > { %s3611_s10 = smov %s2485_s11  ;;  %s3612_s11 = smov %s2578_s17 }
 0x461   : > { %s3613_s12 = smov %s2568_s14  ;;  %22 = sbr.rel (!%p20_p8) target bundleno = 3 (0x3), region = 125 }
 0x466   :  { %2155 = vsyncpa [#allocation3], 1 }
 0x467   :  { %2157 = vsyncpa [#allocation3 + $0x1], 1 }

</bundles_post_ra>
